<compile_context>
chip_gen: v7x
topology: tpu7x:2x2x1
jax: 0.10.0
libtpu: 0.0.40
codegen_flags: <defaults>
</compile_context>

<pallas_src>
import jax
import jax.numpy as jnp
from jax.experimental import pallas as pl
from jax.experimental.pallas import tpu as pltpu

BN_EPS = 1e-5


# --------------------------------------------------------------------------
# Pass 1: BN batch statistics.
#   x_ref    : (TN, C, W)        VMEM
#   w1_ref   : (C, M)            SMEM (scalar reads)
#   stats_ref: (1, 2*M, W+1)     VMEM  rows [0,M) = sum_n h, [M,2M) = sum_n h^2
# The wrapper finishes the reduction over tiles and over the (W+1) axis.
# --------------------------------------------------------------------------
def _stats_kernel(x_ref, w1_ref, stats_ref):
    tn, c_dim, w_dim = x_ref.shape
    m_dim = w1_ref.shape[1]

    # Per-channel rows extended with the max-pooled column: (TN, W+1)
    xs = []
    for c in range(c_dim):
        xc = x_ref[:, c, :].astype(jnp.float32)
        xs.append(jnp.concatenate(
            [xc, jnp.max(xc, axis=1, keepdims=True)], axis=1))

    rows, rows_sq = [], []
    for m in range(m_dim):
        # h_m = sum_c w1[c, m] * x_c  (conv1 bias b1 is absorbed by BN mean)
        h = xs[0] * w1_ref[0, m]
        for c in range(1, c_dim):
            h = h + xs[c] * w1_ref[c, m]
        rows.append(jnp.sum(h, axis=0, keepdims=True))          # (1, W+1)
        rows_sq.append(jnp.sum(h * h, axis=0, keepdims=True))   # (1, W+1)

    stats_ref[0, :, :] = jnp.concatenate(rows + rows_sq, axis=0)  # (2M, W+1)


# --------------------------------------------------------------------------
# Pass 2: folded BN + ReLU + conv_w + sigmoid gate + modulate identity.
#   x_ref  : (TN, C, W)                       VMEM
#   p_ref  : (C+M+3, max(C, M))               SMEM packed params
#            rows [0,C)    : w1 (C, M)
#            rows [C,C+M)  : w2 (M, C)
#            row  C+M      : scale = gamma / sqrt(var + eps)
#            row  C+M+1    : shift = beta - mean * scale
#            row  C+M+2    : b2
#   out_ref: (TN, C, W)                       VMEM (lane-dense on W)
# --------------------------------------------------------------------------
def _apply_kernel(x_ref, p_ref, out_ref):
    tn, c_dim, w_dim = x_ref.shape
    m_dim = p_ref.shape[0] - c_dim - 3

    xs = [x_ref[:, c, :].astype(jnp.float32) for c in range(c_dim)]  # (TN, W)

    hn = []
    for m in range(m_dim):
        h = xs[0] * p_ref[0, m]
        for c in range(1, c_dim):
            h = h + xs[c] * p_ref[c, m]
        h = h * p_ref[c_dim + m_dim, m] + p_ref[c_dim + m_dim + 1, m]
        hn.append(jnp.maximum(h, 0.0))                               # ReLU

    for c in range(c_dim):
        a = hn[0] * p_ref[c_dim + 0, c]
        for m in range(1, m_dim):
            a = a + hn[m] * p_ref[c_dim + m, c]
        a = jax.nn.sigmoid(a + p_ref[c_dim + m_dim + 2, c])
        out_ref[:, c, :] = (xs[c] * a).astype(out_ref.dtype)


def _pick_tile_n(n, c, w):
    """Largest N-tile (dividing N) whose x block stays within ~4 MiB."""
    budget = 4 * 1024 * 1024
    per_row = max(1, c * w * 4)
    tn = max(1, min(n, budget // per_row))
    while n % tn:
        tn -= 1
    return int(tn)


@jax.jit
def coord_att(x_ncw, params):
    """x_ncw: (N, C, W) float32, matching the PyTorch input layout."""
    n, c, w = x_ncw.shape
    w1 = params["w1"].astype(jnp.float32)        # (C, M)
    gamma = params["gamma"].astype(jnp.float32)  # (M,)
    beta = params["beta"].astype(jnp.float32)    # (M,)
    w2 = params["w2"].astype(jnp.float32)        # (M, C)
    b2 = params["b2"].astype(jnp.float32)        # (C,)
    m = w1.shape[1]

    tn = _pick_tile_n(n, c, w)
    nt = n // tn
    x_bytes = n * c * w * 4

    vmem_est = (6 * tn * c * w * 4                     # x/out double buffers
                + (m + c + 4) * tn * (w + 1) * 4       # per-channel temporaries
                + (2 << 20))
    vmem_limit = int(min(max(vmem_est, 32 << 20), 64 << 20))
    cparams = pltpu.CompilerParams(
        dimension_semantics=("parallel",), vmem_limit_bytes=vmem_limit)

    smem_spec = pl.BlockSpec(memory_space=pltpu.MemorySpace.SMEM)
    x_spec = pl.BlockSpec((tn, c, w), lambda i: (i, 0, 0))

    # ---- pass 1: per-channel sum / sum-of-squares of h over all positions ----
    stats = pl.pallas_call(
        _stats_kernel,
        grid=(nt,),
        in_specs=[x_spec, smem_spec],
        out_specs=pl.BlockSpec((1, 2 * m, w + 1), lambda i: (i, 0, 0)),
        out_shape=jax.ShapeDtypeStruct((nt, 2 * m, w + 1), jnp.float32),
        compiler_params=cparams,
        cost_estimate=pl.CostEstimate(
            flops=4 * n * (w + 1) * c * m,
            transcendentals=0,
            bytes_accessed=x_bytes + nt * 2 * m * (w + 1) * 4),
    )(x_ncw, w1)

    tot = jnp.sum(stats, axis=(0, 2))                  # (2M,)
    count = jnp.float32(n * (w + 1))
    mean = tot[:m] / count
    var = jnp.maximum(tot[m:] / count - mean * mean, 0.0)   # biased variance
    scale = gamma * jax.lax.rsqrt(var + BN_EPS)        # folded BN constants
    shift = beta - mean * scale

    # ---- pack all per-channel parameters into one SMEM-resident buffer ----
    p_lanes = max(c, m)

    def _row(v):
        v = v.reshape(1, -1)
        return jnp.pad(v, ((0, 0), (0, p_lanes - v.shape[1])))

    packed = jnp.concatenate(
        [jnp.pad(w1, ((0, 0), (0, p_lanes - m))),
         jnp.pad(w2, ((0, 0), (0, p_lanes - c))),
         _row(scale), _row(shift), _row(b2)], axis=0)  # (C+M+3, p_lanes)

    # ---- pass 2: normalize + conv_w + sigmoid gate + modulate identity ----
    out = pl.pallas_call(
        _apply_kernel,
        grid=(nt,),
        in_specs=[x_spec, smem_spec],
        out_specs=pl.BlockSpec((tn, c, w), lambda i: (i, 0, 0)),
        out_shape=jax.ShapeDtypeStruct((n, c, w), x_ncw.dtype),
        compiler_params=cparams,
        cost_estimate=pl.CostEstimate(
            flops=2 * n * w * c * m * 2 + 4 * n * w * c,
            transcendentals=n * w * c,
            bytes_accessed=2 * x_bytes),
    )(x_ncw, packed)
    return out


def init_params(key, inp, oup, reduction=32):
    """Deterministic synthetic parameters matching CoordAtt.__init__ shapes.

    PyTorch Conv1d weight (out, in, 1) is stored transposed as (in, out) so the
    pointwise conv is a plain per-channel contraction in the kernel.
    """
    mip = max(6, inp // reduction)
    k1, k2, k3, k4 = jax.random.split(key, 4)
    lim1 = 1.0 / (inp ** 0.5)
    lim2 = 1.0 / (mip ** 0.5)
    return dict(
        w1=jax.random.uniform(k1, (inp, mip), jnp.float32, -lim1, lim1),
        b1=jax.random.uniform(k2, (mip,), jnp.float32, -lim1, lim1),
        gamma=jnp.ones((mip,), jnp.float32),
        beta=jnp.zeros((mip,), jnp.float32),
        w2=jax.random.uniform(k3, (mip, oup), jnp.float32, -lim2, lim2),
        b2=jax.random.uniform(k4, (oup,), jnp.float32, -lim2, lim2),
    )


def coord_att_ref(x_ncw, params):
    """Pure-JAX reference mirroring the PyTorch forward exactly (NCW layout)."""
    n, c, w = x_ncw.shape
    x_w = jnp.max(x_ncw, axis=2, keepdims=True)              # AdaptiveMaxPool1d(1)
    y = jnp.concatenate([x_ncw, x_w], axis=2)                # (N, C, W+1)
    h = jnp.einsum("cm,ncw->nmw", params["w1"], y) + params["b1"][None, :, None]
    mean = jnp.mean(h, axis=(0, 2), keepdims=True)
    var = jnp.mean((h - mean) ** 2, axis=(0, 2), keepdims=True)
    h = (h - mean) / jnp.sqrt(var + BN_EPS)
    h = h * params["gamma"][None, :, None] + params["beta"][None, :, None]
    h = jnp.maximum(h, 0.0)
    h_w = h[:, :, :w]                                        # split, drop x_c
    a = jnp.einsum("mo,nmw->now", params["w2"], h_w) + params["b2"][None, :, None]
    a = jax.nn.sigmoid(a)
    return x_ncw * a


if __name__ == "__main__":
    key = jax.random.PRNGKey(0)
    kx, kp = jax.random.split(key)

    N, C, W = 2, 4, 16                  # inp = oup = 4, mip = max(6, 4//32) = 6
    x = jax.random.normal(kx, (N, C, W), jnp.float32)
    params = init_params(kp, inp=C, oup=C, reduction=32)

    out = coord_att(x, params)
    jax.block_until_ready(out)

    ref = coord_att_ref(x, params)
    assert out.shape == (N, C, W)
    assert jnp.allclose(out, ref, atol=1e-5, rtol=1e-5), float(
        jnp.max(jnp.abs(out - ref)))

    print("KERNEL_OK")
</pallas_src>

<mosaic_0001>
module attributes {stable_mosaic.version = 11 : i64} {
  func.func @_apply_kernel(%arg0: i32, %arg1: memref<2x4x16xf32, #tpu.memory_space<vmem>>, %arg2: memref<13x6xf32, #tpu.memory_space<smem>>, %arg3: memref<2x4x16xf32, #tpu.memory_space<vmem>>) attributes {dimension_semantics = [#tpu.dimension_semantics<parallel>], iteration_bounds = array<i64: 1>, scalar_prefetch = 0 : i64, scratch_operands = 0 : i64, tpu.core_type = #tpu.core_type<tc>, window_params = [{transform_indices = @transform_0, window_bounds = array<i64: 2, 4, 16>}, {transform_indices = @transform_1, window_bounds = array<i64: 13, 6>}, {transform_indices = @transform_2, window_bounds = array<i64: 2, 4, 16>}]} {
    %c0 = arith.constant 0 : index
    %c0_0 = arith.constant 0 : index
    %c0_1 = arith.constant 0 : index
    %0 = vector.load %arg1[%c0, %c0_0, %c0_1] : memref<2x4x16xf32, #tpu.memory_space<vmem>>, vector<2x1x16xf32>
    %1 = vector.shape_cast %0 : vector<2x1x16xf32> to vector<2x16xf32>
    %c0_2 = arith.constant 0 : index
    %c1 = arith.constant 1 : index
    %c0_3 = arith.constant 0 : index
    %2 = vector.load %arg1[%c0_2, %c1, %c0_3] : memref<2x4x16xf32, #tpu.memory_space<vmem>>, vector<2x1x16xf32>
    %3 = vector.shape_cast %2 : vector<2x1x16xf32> to vector<2x16xf32>
    %c0_4 = arith.constant 0 : index
    %c2 = arith.constant 2 : index
    %c0_5 = arith.constant 0 : index
    %4 = vector.load %arg1[%c0_4, %c2, %c0_5] : memref<2x4x16xf32, #tpu.memory_space<vmem>>, vector<2x1x16xf32>
    %5 = vector.shape_cast %4 : vector<2x1x16xf32> to vector<2x16xf32>
    %c0_6 = arith.constant 0 : index
    %c3 = arith.constant 3 : index
    %c0_7 = arith.constant 0 : index
    %6 = vector.load %arg1[%c0_6, %c3, %c0_7] : memref<2x4x16xf32, #tpu.memory_space<vmem>>, vector<2x1x16xf32>
    %7 = vector.shape_cast %6 : vector<2x1x16xf32> to vector<2x16xf32>
    %c0_8 = arith.constant 0 : index
    %c0_9 = arith.constant 0 : index
    %8 = memref.load %arg2[%c0_8, %c0_9] : memref<13x6xf32, #tpu.memory_space<smem>>
    %9 = vector.broadcast %8 : f32 to vector<2x16xf32>
    %10 = arith.mulf %1, %9 : vector<2x16xf32>
    %c1_10 = arith.constant 1 : index
    %c0_11 = arith.constant 0 : index
    %11 = memref.load %arg2[%c1_10, %c0_11] : memref<13x6xf32, #tpu.memory_space<smem>>
    %12 = vector.broadcast %11 : f32 to vector<2x16xf32>
    %13 = arith.mulf %3, %12 : vector<2x16xf32>
    %14 = arith.addf %10, %13 : vector<2x16xf32>
    %c2_12 = arith.constant 2 : index
    %c0_13 = arith.constant 0 : index
    %15 = memref.load %arg2[%c2_12, %c0_13] : memref<13x6xf32, #tpu.memory_space<smem>>
    %16 = vector.broadcast %15 : f32 to vector<2x16xf32>
    %17 = arith.mulf %5, %16 : vector<2x16xf32>
    %18 = arith.addf %14, %17 : vector<2x16xf32>
    %c3_14 = arith.constant 3 : index
    %c0_15 = arith.constant 0 : index
    %19 = memref.load %arg2[%c3_14, %c0_15] : memref<13x6xf32, #tpu.memory_space<smem>>
    %20 = vector.broadcast %19 : f32 to vector<2x16xf32>
    %21 = arith.mulf %7, %20 : vector<2x16xf32>
    %22 = arith.addf %18, %21 : vector<2x16xf32>
    %c10 = arith.constant 10 : index
    %c0_16 = arith.constant 0 : index
    %23 = memref.load %arg2[%c10, %c0_16] : memref<13x6xf32, #tpu.memory_space<smem>>
    %24 = vector.broadcast %23 : f32 to vector<2x16xf32>
    %25 = arith.mulf %22, %24 : vector<2x16xf32>
    %c11 = arith.constant 11 : index
    %c0_17 = arith.constant 0 : index
    %26 = memref.load %arg2[%c11, %c0_17] : memref<13x6xf32, #tpu.memory_space<smem>>
    %27 = vector.broadcast %26 : f32 to vector<2x16xf32>
    %28 = arith.addf %25, %27 : vector<2x16xf32>
    %cst = arith.constant 0.000000e+00 : f32
    %29 = vector.broadcast %cst : f32 to vector<2x16xf32>
    %30 = arith.maximumf %28, %29 : vector<2x16xf32>
    %c0_18 = arith.constant 0 : index
    %c1_19 = arith.constant 1 : index
    %31 = memref.load %arg2[%c0_18, %c1_19] : memref<13x6xf32, #tpu.memory_space<smem>>
    %32 = vector.broadcast %31 : f32 to vector<2x16xf32>
    %33 = arith.mulf %1, %32 : vector<2x16xf32>
    %c1_20 = arith.constant 1 : index
    %c1_21 = arith.constant 1 : index
    %34 = memref.load %arg2[%c1_20, %c1_21] : memref<13x6xf32, #tpu.memory_space<smem>>
    %35 = vector.broadcast %34 : f32 to vector<2x16xf32>
    %36 = arith.mulf %3, %35 : vector<2x16xf32>
    %37 = arith.addf %33, %36 : vector<2x16xf32>
    %c2_22 = arith.constant 2 : index
    %c1_23 = arith.constant 1 : index
    %38 = memref.load %arg2[%c2_22, %c1_23] : memref<13x6xf32, #tpu.memory_space<smem>>
    %39 = vector.broadcast %38 : f32 to vector<2x16xf32>
    %40 = arith.mulf %5, %39 : vector<2x16xf32>
    %41 = arith.addf %37, %40 : vector<2x16xf32>
    %c3_24 = arith.constant 3 : index
    %c1_25 = arith.constant 1 : index
    %42 = memref.load %arg2[%c3_24, %c1_25] : memref<13x6xf32, #tpu.memory_space<smem>>
    %43 = vector.broadcast %42 : f32 to vector<2x16xf32>
    %44 = arith.mulf %7, %43 : vector<2x16xf32>
    %45 = arith.addf %41, %44 : vector<2x16xf32>
    %c10_26 = arith.constant 10 : index
    %c1_27 = arith.constant 1 : index
    %46 = memref.load %arg2[%c10_26, %c1_27] : memref<13x6xf32, #tpu.memory_space<smem>>
    %47 = vector.broadcast %46 : f32 to vector<2x16xf32>
    %48 = arith.mulf %45, %47 : vector<2x16xf32>
    %c11_28 = arith.constant 11 : index
    %c1_29 = arith.constant 1 : index
    %49 = memref.load %arg2[%c11_28, %c1_29] : memref<13x6xf32, #tpu.memory_space<smem>>
    %50 = vector.broadcast %49 : f32 to vector<2x16xf32>
    %51 = arith.addf %48, %50 : vector<2x16xf32>
    %cst_30 = arith.constant 0.000000e+00 : f32
    %52 = vector.broadcast %cst_30 : f32 to vector<2x16xf32>
    %53 = arith.maximumf %51, %52 : vector<2x16xf32>
    %c0_31 = arith.constant 0 : index
    %c2_32 = arith.constant 2 : index
    %54 = memref.load %arg2[%c0_31, %c2_32] : memref<13x6xf32, #tpu.memory_space<smem>>
    %55 = vector.broadcast %54 : f32 to vector<2x16xf32>
    %56 = arith.mulf %1, %55 : vector<2x16xf32>
    %c1_33 = arith.constant 1 : index
    %c2_34 = arith.constant 2 : index
    %57 = memref.load %arg2[%c1_33, %c2_34] : memref<13x6xf32, #tpu.memory_space<smem>>
    %58 = vector.broadcast %57 : f32 to vector<2x16xf32>
    %59 = arith.mulf %3, %58 : vector<2x16xf32>
    %60 = arith.addf %56, %59 : vector<2x16xf32>
    %c2_35 = arith.constant 2 : index
    %c2_36 = arith.constant 2 : index
    %61 = memref.load %arg2[%c2_35, %c2_36] : memref<13x6xf32, #tpu.memory_space<smem>>
    %62 = vector.broadcast %61 : f32 to vector<2x16xf32>
    %63 = arith.mulf %5, %62 : vector<2x16xf32>
    %64 = arith.addf %60, %63 : vector<2x16xf32>
    %c3_37 = arith.constant 3 : index
    %c2_38 = arith.constant 2 : index
    %65 = memref.load %arg2[%c3_37, %c2_38] : memref<13x6xf32, #tpu.memory_space<smem>>
    %66 = vector.broadcast %65 : f32 to vector<2x16xf32>
    %67 = arith.mulf %7, %66 : vector<2x16xf32>
    %68 = arith.addf %64, %67 : vector<2x16xf32>
    %c10_39 = arith.constant 10 : index
    %c2_40 = arith.constant 2 : index
    %69 = memref.load %arg2[%c10_39, %c2_40] : memref<13x6xf32, #tpu.memory_space<smem>>
    %70 = vector.broadcast %69 : f32 to vector<2x16xf32>
    %71 = arith.mulf %68, %70 : vector<2x16xf32>
    %c11_41 = arith.constant 11 : index
    %c2_42 = arith.constant 2 : index
    %72 = memref.load %arg2[%c11_41, %c2_42] : memref<13x6xf32, #tpu.memory_space<smem>>
    %73 = vector.broadcast %72 : f32 to vector<2x16xf32>
    %74 = arith.addf %71, %73 : vector<2x16xf32>
    %cst_43 = arith.constant 0.000000e+00 : f32
    %75 = vector.broadcast %cst_43 : f32 to vector<2x16xf32>
    %76 = arith.maximumf %74, %75 : vector<2x16xf32>
    %c0_44 = arith.constant 0 : index
    %c3_45 = arith.constant 3 : index
    %77 = memref.load %arg2[%c0_44, %c3_45] : memref<13x6xf32, #tpu.memory_space<smem>>
    %78 = vector.broadcast %77 : f32 to vector<2x16xf32>
    %79 = arith.mulf %1, %78 : vector<2x16xf32>
    %c1_46 = arith.constant 1 : index
    %c3_47 = arith.constant 3 : index
    %80 = memref.load %arg2[%c1_46, %c3_47] : memref<13x6xf32, #tpu.memory_space<smem>>
    %81 = vector.broadcast %80 : f32 to vector<2x16xf32>
    %82 = arith.mulf %3, %81 : vector<2x16xf32>
    %83 = arith.addf %79, %82 : vector<2x16xf32>
    %c2_48 = arith.constant 2 : index
    %c3_49 = arith.constant 3 : index
    %84 = memref.load %arg2[%c2_48, %c3_49] : memref<13x6xf32, #tpu.memory_space<smem>>
    %85 = vector.broadcast %84 : f32 to vector<2x16xf32>
    %86 = arith.mulf %5, %85 : vector<2x16xf32>
    %87 = arith.addf %83, %86 : vector<2x16xf32>
    %c3_50 = arith.constant 3 : index
    %c3_51 = arith.constant 3 : index
    %88 = memref.load %arg2[%c3_50, %c3_51] : memref<13x6xf32, #tpu.memory_space<smem>>
    %89 = vector.broadcast %88 : f32 to vector<2x16xf32>
    %90 = arith.mulf %7, %89 : vector<2x16xf32>
    %91 = arith.addf %87, %90 : vector<2x16xf32>
    %c10_52 = arith.constant 10 : index
    %c3_53 = arith.constant 3 : index
    %92 = memref.load %arg2[%c10_52, %c3_53] : memref<13x6xf32, #tpu.memory_space<smem>>
    %93 = vector.broadcast %92 : f32 to vector<2x16xf32>
    %94 = arith.mulf %91, %93 : vector<2x16xf32>
    %c11_54 = arith.constant 11 : index
    %c3_55 = arith.constant 3 : index
    %95 = memref.load %arg2[%c11_54, %c3_55] : memref<13x6xf32, #tpu.memory_space<smem>>
    %96 = vector.broadcast %95 : f32 to vector<2x16xf32>
    %97 = arith.addf %94, %96 : vector<2x16xf32>
    %cst_56 = arith.constant 0.000000e+00 : f32
    %98 = vector.broadcast %cst_56 : f32 to vector<2x16xf32>
    %99 = arith.maximumf %97, %98 : vector<2x16xf32>
    %c0_57 = arith.constant 0 : index
    %c4 = arith.constant 4 : index
    %100 = memref.load %arg2[%c0_57, %c4] : memref<13x6xf32, #tpu.memory_space<smem>>
    %101 = vector.broadcast %100 : f32 to vector<2x16xf32>
    %102 = arith.mulf %1, %101 : vector<2x16xf32>
    %c1_58 = arith.constant 1 : index
    %c4_59 = arith.constant 4 : index
    %103 = memref.load %arg2[%c1_58, %c4_59] : memref<13x6xf32, #tpu.memory_space<smem>>
    %104 = vector.broadcast %103 : f32 to vector<2x16xf32>
    %105 = arith.mulf %3, %104 : vector<2x16xf32>
    %106 = arith.addf %102, %105 : vector<2x16xf32>
    %c2_60 = arith.constant 2 : index
    %c4_61 = arith.constant 4 : index
    %107 = memref.load %arg2[%c2_60, %c4_61] : memref<13x6xf32, #tpu.memory_space<smem>>
    %108 = vector.broadcast %107 : f32 to vector<2x16xf32>
    %109 = arith.mulf %5, %108 : vector<2x16xf32>
    %110 = arith.addf %106, %109 : vector<2x16xf32>
    %c3_62 = arith.constant 3 : index
    %c4_63 = arith.constant 4 : index
    %111 = memref.load %arg2[%c3_62, %c4_63] : memref<13x6xf32, #tpu.memory_space<smem>>
    %112 = vector.broadcast %111 : f32 to vector<2x16xf32>
    %113 = arith.mulf %7, %112 : vector<2x16xf32>
    %114 = arith.addf %110, %113 : vector<2x16xf32>
    %c10_64 = arith.constant 10 : index
    %c4_65 = arith.constant 4 : index
    %115 = memref.load %arg2[%c10_64, %c4_65] : memref<13x6xf32, #tpu.memory_space<smem>>
    %116 = vector.broadcast %115 : f32 to vector<2x16xf32>
    %117 = arith.mulf %114, %116 : vector<2x16xf32>
    %c11_66 = arith.constant 11 : index
    %c4_67 = arith.constant 4 : index
    %118 = memref.load %arg2[%c11_66, %c4_67] : memref<13x6xf32, #tpu.memory_space<smem>>
    %119 = vector.broadcast %118 : f32 to vector<2x16xf32>
    %120 = arith.addf %117, %119 : vector<2x16xf32>
    %cst_68 = arith.constant 0.000000e+00 : f32
    %121 = vector.broadcast %cst_68 : f32 to vector<2x16xf32>
    %122 = arith.maximumf %120, %121 : vector<2x16xf32>
    %c0_69 = arith.constant 0 : index
    %c5 = arith.constant 5 : index
    %123 = memref.load %arg2[%c0_69, %c5] : memref<13x6xf32, #tpu.memory_space<smem>>
    %124 = vector.broadcast %123 : f32 to vector<2x16xf32>
    %125 = arith.mulf %1, %124 : vector<2x16xf32>
    %c1_70 = arith.constant 1 : index
    %c5_71 = arith.constant 5 : index
    %126 = memref.load %arg2[%c1_70, %c5_71] : memref<13x6xf32, #tpu.memory_space<smem>>
    %127 = vector.broadcast %126 : f32 to vector<2x16xf32>
    %128 = arith.mulf %3, %127 : vector<2x16xf32>
    %129 = arith.addf %125, %128 : vector<2x16xf32>
    %c2_72 = arith.constant 2 : index
    %c5_73 = arith.constant 5 : index
    %130 = memref.load %arg2[%c2_72, %c5_73] : memref<13x6xf32, #tpu.memory_space<smem>>
    %131 = vector.broadcast %130 : f32 to vector<2x16xf32>
    %132 = arith.mulf %5, %131 : vector<2x16xf32>
    %133 = arith.addf %129, %132 : vector<2x16xf32>
    %c3_74 = arith.constant 3 : index
    %c5_75 = arith.constant 5 : index
    %134 = memref.load %arg2[%c3_74, %c5_75] : memref<13x6xf32, #tpu.memory_space<smem>>
    %135 = vector.broadcast %134 : f32 to vector<2x16xf32>
    %136 = arith.mulf %7, %135 : vector<2x16xf32>
    %137 = arith.addf %133, %136 : vector<2x16xf32>
    %c10_76 = arith.constant 10 : index
    %c5_77 = arith.constant 5 : index
    %138 = memref.load %arg2[%c10_76, %c5_77] : memref<13x6xf32, #tpu.memory_space<smem>>
    %139 = vector.broadcast %138 : f32 to vector<2x16xf32>
    %140 = arith.mulf %137, %139 : vector<2x16xf32>
    %c11_78 = arith.constant 11 : index
    %c5_79 = arith.constant 5 : index
    %141 = memref.load %arg2[%c11_78, %c5_79] : memref<13x6xf32, #tpu.memory_space<smem>>
    %142 = vector.broadcast %141 : f32 to vector<2x16xf32>
    %143 = arith.addf %140, %142 : vector<2x16xf32>
    %cst_80 = arith.constant 0.000000e+00 : f32
    %144 = vector.broadcast %cst_80 : f32 to vector<2x16xf32>
    %145 = arith.maximumf %143, %144 : vector<2x16xf32>
    %c4_81 = arith.constant 4 : index
    %c0_82 = arith.constant 0 : index
    %146 = memref.load %arg2[%c4_81, %c0_82] : memref<13x6xf32, #tpu.memory_space<smem>>
    %147 = vector.broadcast %146 : f32 to vector<2x16xf32>
    %148 = arith.mulf %30, %147 : vector<2x16xf32>
    %c5_83 = arith.constant 5 : index
    %c0_84 = arith.constant 0 : index
    %149 = memref.load %arg2[%c5_83, %c0_84] : memref<13x6xf32, #tpu.memory_space<smem>>
    %150 = vector.broadcast %149 : f32 to vector<2x16xf32>
    %151 = arith.mulf %53, %150 : vector<2x16xf32>
    %152 = arith.addf %148, %151 : vector<2x16xf32>
    %c6 = arith.constant 6 : index
    %c0_85 = arith.constant 0 : index
    %153 = memref.load %arg2[%c6, %c0_85] : memref<13x6xf32, #tpu.memory_space<smem>>
    %154 = vector.broadcast %153 : f32 to vector<2x16xf32>
    %155 = arith.mulf %76, %154 : vector<2x16xf32>
    %156 = arith.addf %152, %155 : vector<2x16xf32>
    %c7 = arith.constant 7 : index
    %c0_86 = arith.constant 0 : index
    %157 = memref.load %arg2[%c7, %c0_86] : memref<13x6xf32, #tpu.memory_space<smem>>
    %158 = vector.broadcast %157 : f32 to vector<2x16xf32>
    %159 = arith.mulf %99, %158 : vector<2x16xf32>
    %160 = arith.addf %156, %159 : vector<2x16xf32>
    %c8 = arith.constant 8 : index
    %c0_87 = arith.constant 0 : index
    %161 = memref.load %arg2[%c8, %c0_87] : memref<13x6xf32, #tpu.memory_space<smem>>
    %162 = vector.broadcast %161 : f32 to vector<2x16xf32>
    %163 = arith.mulf %122, %162 : vector<2x16xf32>
    %164 = arith.addf %160, %163 : vector<2x16xf32>
    %c9 = arith.constant 9 : index
    %c0_88 = arith.constant 0 : index
    %165 = memref.load %arg2[%c9, %c0_88] : memref<13x6xf32, #tpu.memory_space<smem>>
    %166 = vector.broadcast %165 : f32 to vector<2x16xf32>
    %167 = arith.mulf %145, %166 : vector<2x16xf32>
    %168 = arith.addf %164, %167 : vector<2x16xf32>
    %c12 = arith.constant 12 : index
    %c0_89 = arith.constant 0 : index
    %169 = memref.load %arg2[%c12, %c0_89] : memref<13x6xf32, #tpu.memory_space<smem>>
    %170 = vector.broadcast %169 : f32 to vector<2x16xf32>
    %171 = arith.addf %168, %170 : vector<2x16xf32>
    %172 = arith.negf %171 : vector<2x16xf32>
    %173 = math.exp %172 : vector<2x16xf32>
    %cst_90 = arith.constant 1.000000e+00 : f32
    %174 = vector.broadcast %cst_90 : f32 to vector<2x16xf32>
    %175 = arith.addf %174, %173 : vector<2x16xf32>
    %176 = arith.divf %174, %175 : vector<2x16xf32>
    %177 = arith.mulf %1, %176 : vector<2x16xf32>
    %c0_91 = arith.constant 0 : index
    %c0_92 = arith.constant 0 : index
    %c0_93 = arith.constant 0 : index
    %178 = vector.load %arg3[%c0_91, %c0_92, %c0_93] : memref<2x4x16xf32, #tpu.memory_space<vmem>>, vector<2x1x16xf32>
    %179 = vector.shape_cast %178 : vector<2x1x16xf32> to vector<2x16xf32>
    %180 = vector.shape_cast %177 : vector<2x16xf32> to vector<2x1x16xf32>
    tpu.vector_store %arg3[%c0_91, %c0_92, %c0_93], %180 {strides = array<i32>} : memref<2x4x16xf32, #tpu.memory_space<vmem>>, vector<2x1x16xf32>,
    %c4_94 = arith.constant 4 : index
    %c1_95 = arith.constant 1 : index
    %181 = memref.load %arg2[%c4_94, %c1_95] : memref<13x6xf32, #tpu.memory_space<smem>>
    %182 = vector.broadcast %181 : f32 to vector<2x16xf32>
    %183 = arith.mulf %30, %182 : vector<2x16xf32>
    %c5_96 = arith.constant 5 : index
    %c1_97 = arith.constant 1 : index
    %184 = memref.load %arg2[%c5_96, %c1_97] : memref<13x6xf32, #tpu.memory_space<smem>>
    %185 = vector.broadcast %184 : f32 to vector<2x16xf32>
    %186 = arith.mulf %53, %185 : vector<2x16xf32>
    %187 = arith.addf %183, %186 : vector<2x16xf32>
    %c6_98 = arith.constant 6 : index
    %c1_99 = arith.constant 1 : index
    %188 = memref.load %arg2[%c6_98, %c1_99] : memref<13x6xf32, #tpu.memory_space<smem>>
    %189 = vector.broadcast %188 : f32 to vector<2x16xf32>
    %190 = arith.mulf %76, %189 : vector<2x16xf32>
    %191 = arith.addf %187, %190 : vector<2x16xf32>
    %c7_100 = arith.constant 7 : index
    %c1_101 = arith.constant 1 : index
    %192 = memref.load %arg2[%c7_100, %c1_101] : memref<13x6xf32, #tpu.memory_space<smem>>
    %193 = vector.broadcast %192 : f32 to vector<2x16xf32>
    %194 = arith.mulf %99, %193 : vector<2x16xf32>
    %195 = arith.addf %191, %194 : vector<2x16xf32>
    %c8_102 = arith.constant 8 : index
    %c1_103 = arith.constant 1 : index
    %196 = memref.load %arg2[%c8_102, %c1_103] : memref<13x6xf32, #tpu.memory_space<smem>>
    %197 = vector.broadcast %196 : f32 to vector<2x16xf32>
    %198 = arith.mulf %122, %197 : vector<2x16xf32>
    %199 = arith.addf %195, %198 : vector<2x16xf32>
    %c9_104 = arith.constant 9 : index
    %c1_105 = arith.constant 1 : index
    %200 = memref.load %arg2[%c9_104, %c1_105] : memref<13x6xf32, #tpu.memory_space<smem>>
    %201 = vector.broadcast %200 : f32 to vector<2x16xf32>
    %202 = arith.mulf %145, %201 : vector<2x16xf32>
    %203 = arith.addf %199, %202 : vector<2x16xf32>
    %c12_106 = arith.constant 12 : index
    %c1_107 = arith.constant 1 : index
    %204 = memref.load %arg2[%c12_106, %c1_107] : memref<13x6xf32, #tpu.memory_space<smem>>
    %205 = vector.broadcast %204 : f32 to vector<2x16xf32>
    %206 = arith.addf %203, %205 : vector<2x16xf32>
    %207 = arith.negf %206 : vector<2x16xf32>
    %208 = math.exp %207 : vector<2x16xf32>
    %cst_108 = arith.constant 1.000000e+00 : f32
    %209 = vector.broadcast %cst_108 : f32 to vector<2x16xf32>
    %210 = arith.addf %209, %208 : vector<2x16xf32>
    %211 = arith.divf %209, %210 : vector<2x16xf32>
    %212 = arith.mulf %3, %211 : vector<2x16xf32>
    %c0_109 = arith.constant 0 : index
    %c1_110 = arith.constant 1 : index
    %c0_111 = arith.constant 0 : index
    %213 = vector.load %arg3[%c0_109, %c1_110, %c0_111] : memref<2x4x16xf32, #tpu.memory_space<vmem>>, vector<2x1x16xf32>
    %214 = vector.shape_cast %213 : vector<2x1x16xf32> to vector<2x16xf32>
    %215 = vector.shape_cast %212 : vector<2x16xf32> to vector<2x1x16xf32>
    tpu.vector_store %arg3[%c0_109, %c1_110, %c0_111], %215 {strides = array<i32>} : memref<2x4x16xf32, #tpu.memory_space<vmem>>, vector<2x1x16xf32>,
    %c4_112 = arith.constant 4 : index
    %c2_113 = arith.constant 2 : index
    %216 = memref.load %arg2[%c4_112, %c2_113] : memref<13x6xf32, #tpu.memory_space<smem>>
    %217 = vector.broadcast %216 : f32 to vector<2x16xf32>
    %218 = arith.mulf %30, %217 : vector<2x16xf32>
    %c5_114 = arith.constant 5 : index
    %c2_115 = arith.constant 2 : index
    %219 = memref.load %arg2[%c5_114, %c2_115] : memref<13x6xf32, #tpu.memory_space<smem>>
    %220 = vector.broadcast %219 : f32 to vector<2x16xf32>
    %221 = arith.mulf %53, %220 : vector<2x16xf32>
    %222 = arith.addf %218, %221 : vector<2x16xf32>
    %c6_116 = arith.constant 6 : index
    %c2_117 = arith.constant 2 : index
    %223 = memref.load %arg2[%c6_116, %c2_117] : memref<13x6xf32, #tpu.memory_space<smem>>
    %224 = vector.broadcast %223 : f32 to vector<2x16xf32>
    %225 = arith.mulf %76, %224 : vector<2x16xf32>
    %226 = arith.addf %222, %225 : vector<2x16xf32>
    %c7_118 = arith.constant 7 : index
    %c2_119 = arith.constant 2 : index
    %227 = memref.load %arg2[%c7_118, %c2_119] : memref<13x6xf32, #tpu.memory_space<smem>>
    %228 = vector.broadcast %227 : f32 to vector<2x16xf32>
    %229 = arith.mulf %99, %228 : vector<2x16xf32>
    %230 = arith.addf %226, %229 : vector<2x16xf32>
    %c8_120 = arith.constant 8 : index
    %c2_121 = arith.constant 2 : index
    %231 = memref.load %arg2[%c8_120, %c2_121] : memref<13x6xf32, #tpu.memory_space<smem>>
    %232 = vector.broadcast %231 : f32 to vector<2x16xf32>
    %233 = arith.mulf %122, %232 : vector<2x16xf32>
    %234 = arith.addf %230, %233 : vector<2x16xf32>
    %c9_122 = arith.constant 9 : index
    %c2_123 = arith.constant 2 : index
    %235 = memref.load %arg2[%c9_122, %c2_123] : memref<13x6xf32, #tpu.memory_space<smem>>
    %236 = vector.broadcast %235 : f32 to vector<2x16xf32>
    %237 = arith.mulf %145, %236 : vector<2x16xf32>
    %238 = arith.addf %234, %237 : vector<2x16xf32>
    %c12_124 = arith.constant 12 : index
    %c2_125 = arith.constant 2 : index
    %239 = memref.load %arg2[%c12_124, %c2_125] : memref<13x6xf32, #tpu.memory_space<smem>>
    %240 = vector.broadcast %239 : f32 to vector<2x16xf32>
    %241 = arith.addf %238, %240 : vector<2x16xf32>
    %242 = arith.negf %241 : vector<2x16xf32>
    %243 = math.exp %242 : vector<2x16xf32>
    %cst_126 = arith.constant 1.000000e+00 : f32
    %244 = vector.broadcast %cst_126 : f32 to vector<2x16xf32>
    %245 = arith.addf %244, %243 : vector<2x16xf32>
    %246 = arith.divf %244, %245 : vector<2x16xf32>
    %247 = arith.mulf %5, %246 : vector<2x16xf32>
    %c0_127 = arith.constant 0 : index
    %c2_128 = arith.constant 2 : index
    %c0_129 = arith.constant 0 : index
    %248 = vector.load %arg3[%c0_127, %c2_128, %c0_129] : memref<2x4x16xf32, #tpu.memory_space<vmem>>, vector<2x1x16xf32>
    %249 = vector.shape_cast %248 : vector<2x1x16xf32> to vector<2x16xf32>
    %250 = vector.shape_cast %247 : vector<2x16xf32> to vector<2x1x16xf32>
    tpu.vector_store %arg3[%c0_127, %c2_128, %c0_129], %250 {strides = array<i32>} : memref<2x4x16xf32, #tpu.memory_space<vmem>>, vector<2x1x16xf32>,
    %c4_130 = arith.constant 4 : index
    %c3_131 = arith.constant 3 : index
    %251 = memref.load %arg2[%c4_130, %c3_131] : memref<13x6xf32, #tpu.memory_space<smem>>
    %252 = vector.broadcast %251 : f32 to vector<2x16xf32>
    %253 = arith.mulf %30, %252 : vector<2x16xf32>
    %c5_132 = arith.constant 5 : index
    %c3_133 = arith.constant 3 : index
    %254 = memref.load %arg2[%c5_132, %c3_133] : memref<13x6xf32, #tpu.memory_space<smem>>
    %255 = vector.broadcast %254 : f32 to vector<2x16xf32>
    %256 = arith.mulf %53, %255 : vector<2x16xf32>
    %257 = arith.addf %253, %256 : vector<2x16xf32>
    %c6_134 = arith.constant 6 : index
    %c3_135 = arith.constant 3 : index
    %258 = memref.load %arg2[%c6_134, %c3_135] : memref<13x6xf32, #tpu.memory_space<smem>>
    %259 = vector.broadcast %258 : f32 to vector<2x16xf32>
    %260 = arith.mulf %76, %259 : vector<2x16xf32>
    %261 = arith.addf %257, %260 : vector<2x16xf32>
    %c7_136 = arith.constant 7 : index
    %c3_137 = arith.constant 3 : index
    %262 = memref.load %arg2[%c7_136, %c3_137] : memref<13x6xf32, #tpu.memory_space<smem>>
    %263 = vector.broadcast %262 : f32 to vector<2x16xf32>
    %264 = arith.mulf %99, %263 : vector<2x16xf32>
    %265 = arith.addf %261, %264 : vector<2x16xf32>
    %c8_138 = arith.constant 8 : index
    %c3_139 = arith.constant 3 : index
    %266 = memref.load %arg2[%c8_138, %c3_139] : memref<13x6xf32, #tpu.memory_space<smem>>
    %267 = vector.broadcast %266 : f32 to vector<2x16xf32>
    %268 = arith.mulf %122, %267 : vector<2x16xf32>
    %269 = arith.addf %265, %268 : vector<2x16xf32>
    %c9_140 = arith.constant 9 : index
    %c3_141 = arith.constant 3 : index
    %270 = memref.load %arg2[%c9_140, %c3_141] : memref<13x6xf32, #tpu.memory_space<smem>>
    %271 = vector.broadcast %270 : f32 to vector<2x16xf32>
    %272 = arith.mulf %145, %271 : vector<2x16xf32>
    %273 = arith.addf %269, %272 : vector<2x16xf32>
    %c12_142 = arith.constant 12 : index
    %c3_143 = arith.constant 3 : index
    %274 = memref.load %arg2[%c12_142, %c3_143] : memref<13x6xf32, #tpu.memory_space<smem>>
    %275 = vector.broadcast %274 : f32 to vector<2x16xf32>
    %276 = arith.addf %273, %275 : vector<2x16xf32>
    %277 = arith.negf %276 : vector<2x16xf32>
    %278 = math.exp %277 : vector<2x16xf32>
    %cst_144 = arith.constant 1.000000e+00 : f32
    %279 = vector.broadcast %cst_144 : f32 to vector<2x16xf32>
    %280 = arith.addf %279, %278 : vector<2x16xf32>
    %281 = arith.divf %279, %280 : vector<2x16xf32>
    %282 = arith.mulf %7, %281 : vector<2x16xf32>
    %c0_145 = arith.constant 0 : index
    %c3_146 = arith.constant 3 : index
    %c0_147 = arith.constant 0 : index
    %283 = vector.load %arg3[%c0_145, %c3_146, %c0_147] : memref<2x4x16xf32, #tpu.memory_space<vmem>>, vector<2x1x16xf32>
    %284 = vector.shape_cast %283 : vector<2x1x16xf32> to vector<2x16xf32>
    %285 = vector.shape_cast %282 : vector<2x16xf32> to vector<2x1x16xf32>
    tpu.vector_store %arg3[%c0_145, %c3_146, %c0_147], %285 {strides = array<i32>} : memref<2x4x16xf32, #tpu.memory_space<vmem>>, vector<2x1x16xf32>,
    return
  }
  func.func @transform_0(%arg0: i32) -> (i32, i32, i32) {
    %c0_i32 = arith.constant 0 : i32
    %c0_i32_0 = arith.constant 0 : i32
    %c0_i32_1 = arith.constant 0 : i32
    return %arg0, %c0_i32, %c0_i32_0 : i32, i32, i32
  }
  func.func @transform_1(%arg0: i32) -> (i32, i32) {
    %c0_i32 = arith.constant 0 : i32
    %c0_i32_0 = arith.constant 0 : i32
    %c0_i32_1 = arith.constant 0 : i32
    return %c0_i32, %c0_i32_0 : i32, i32
  }
  func.func @transform_2(%arg0: i32) -> (i32, i32, i32) {
    %c0_i32 = arith.constant 0 : i32
    %c0_i32_0 = arith.constant 0 : i32
    %c0_i32_1 = arith.constant 0 : i32
    return %arg0, %c0_i32, %c0_i32_0 : i32, i32, i32
  }
}

module attributes {stable_mosaic.version = 11 : i64} {
  func.func @_stats_kernel(%arg0: i32, %arg1: memref<2x4x16xf32, #tpu.memory_space<vmem>>, %arg2: memref<4x6xf32, #tpu.memory_space<smem>>, %arg3: memref<1x12x17xf32, #tpu.memory_space<vmem>>) attributes {dimension_semantics = [#tpu.dimension_semantics<parallel>], iteration_bounds = array<i64: 1>, scalar_prefetch = 0 : i64, scratch_operands = 0 : i64, tpu.core_type = #tpu.core_type<tc>, window_params = [{transform_indices = @transform_0, window_bounds = array<i64: 2, 4, 16>}, {transform_indices = @transform_1, window_bounds = array<i64: 4, 6>}, {transform_indices = @transform_2, window_bounds = array<i64: 1, 12, 17>}]} {
    %c0 = arith.constant 0 : index
    %c0_0 = arith.constant 0 : index
    %c0_1 = arith.constant 0 : index
    %0 = vector.load %arg1[%c0, %c0_0, %c0_1] : memref<2x4x16xf32, #tpu.memory_space<vmem>>, vector<2x1x16xf32>
    %1 = vector.shape_cast %0 : vector<2x1x16xf32> to vector<2x16xf32>
    %cst = arith.constant dense<0xFF800000> : vector<2xf32>
    %2 = vector.multi_reduction <maximumf>, %1, %cst [1] : vector<2x16xf32> to vector<2xf32>
    %3 = vector.shape_cast %2 : vector<2xf32> to vector<2x1xf32>
    %4 = tpu.concatenate %1, %3 in 1 : vector<2x16xf32>, vector<2x1xf32> -> vector<2x17xf32>
    %c0_2 = arith.constant 0 : index
    %c1 = arith.constant 1 : index
    %c0_3 = arith.constant 0 : index
    %5 = vector.load %arg1[%c0_2, %c1, %c0_3] : memref<2x4x16xf32, #tpu.memory_space<vmem>>, vector<2x1x16xf32>
    %6 = vector.shape_cast %5 : vector<2x1x16xf32> to vector<2x16xf32>
    %cst_4 = arith.constant dense<0xFF800000> : vector<2xf32>
    %7 = vector.multi_reduction <maximumf>, %6, %cst_4 [1] : vector<2x16xf32> to vector<2xf32>
    %8 = vector.shape_cast %7 : vector<2xf32> to vector<2x1xf32>
    %9 = tpu.concatenate %6, %8 in 1 : vector<2x16xf32>, vector<2x1xf32> -> vector<2x17xf32>
    %c0_5 = arith.constant 0 : index
    %c2 = arith.constant 2 : index
    %c0_6 = arith.constant 0 : index
    %10 = vector.load %arg1[%c0_5, %c2, %c0_6] : memref<2x4x16xf32, #tpu.memory_space<vmem>>, vector<2x1x16xf32>
    %11 = vector.shape_cast %10 : vector<2x1x16xf32> to vector<2x16xf32>
    %cst_7 = arith.constant dense<0xFF800000> : vector<2xf32>
    %12 = vector.multi_reduction <maximumf>, %11, %cst_7 [1] : vector<2x16xf32> to vector<2xf32>
    %13 = vector.shape_cast %12 : vector<2xf32> to vector<2x1xf32>
    %14 = tpu.concatenate %11, %13 in 1 : vector<2x16xf32>, vector<2x1xf32> -> vector<2x17xf32>
    %c0_8 = arith.constant 0 : index
    %c3 = arith.constant 3 : index
    %c0_9 = arith.constant 0 : index
    %15 = vector.load %arg1[%c0_8, %c3, %c0_9] : memref<2x4x16xf32, #tpu.memory_space<vmem>>, vector<2x1x16xf32>
    %16 = vector.shape_cast %15 : vector<2x1x16xf32> to vector<2x16xf32>
    %cst_10 = arith.constant dense<0xFF800000> : vector<2xf32>
    %17 = vector.multi_reduction <maximumf>, %16, %cst_10 [1] : vector<2x16xf32> to vector<2xf32>
    %18 = vector.shape_cast %17 : vector<2xf32> to vector<2x1xf32>
    %19 = tpu.concatenate %16, %18 in 1 : vector<2x16xf32>, vector<2x1xf32> -> vector<2x17xf32>
    %c0_11 = arith.constant 0 : index
    %c0_12 = arith.constant 0 : index
    %20 = memref.load %arg2[%c0_11, %c0_12] : memref<4x6xf32, #tpu.memory_space<smem>>
    %21 = vector.broadcast %20 : f32 to vector<2x17xf32>
    %22 = arith.mulf %4, %21 : vector<2x17xf32>
    %c1_13 = arith.constant 1 : index
    %c0_14 = arith.constant 0 : index
    %23 = memref.load %arg2[%c1_13, %c0_14] : memref<4x6xf32, #tpu.memory_space<smem>>
    %24 = vector.broadcast %23 : f32 to vector<2x17xf32>
    %25 = arith.mulf %9, %24 : vector<2x17xf32>
    %26 = arith.addf %22, %25 : vector<2x17xf32>
    %c2_15 = arith.constant 2 : index
    %c0_16 = arith.constant 0 : index
    %27 = memref.load %arg2[%c2_15, %c0_16] : memref<4x6xf32, #tpu.memory_space<smem>>
    %28 = vector.broadcast %27 : f32 to vector<2x17xf32>
    %29 = arith.mulf %14, %28 : vector<2x17xf32>
    %30 = arith.addf %26, %29 : vector<2x17xf32>
    %c3_17 = arith.constant 3 : index
    %c0_18 = arith.constant 0 : index
    %31 = memref.load %arg2[%c3_17, %c0_18] : memref<4x6xf32, #tpu.memory_space<smem>>
    %32 = vector.broadcast %31 : f32 to vector<2x17xf32>
    %33 = arith.mulf %19, %32 : vector<2x17xf32>
    %34 = arith.addf %30, %33 : vector<2x17xf32>
    %cst_19 = arith.constant dense<0.000000e+00> : vector<17xf32>
    %35 = vector.multi_reduction <add>, %34, %cst_19 [0] : vector<2x17xf32> to vector<17xf32>
    %36 = vector.shape_cast %35 : vector<17xf32> to vector<1x17xf32>
    %37 = arith.mulf %34, %34 : vector<2x17xf32>
    %cst_20 = arith.constant dense<0.000000e+00> : vector<17xf32>
    %38 = vector.multi_reduction <add>, %37, %cst_20 [0] : vector<2x17xf32> to vector<17xf32>
    %39 = vector.shape_cast %38 : vector<17xf32> to vector<1x17xf32>
    %c0_21 = arith.constant 0 : index
    %c1_22 = arith.constant 1 : index
    %40 = memref.load %arg2[%c0_21, %c1_22] : memref<4x6xf32, #tpu.memory_space<smem>>
    %41 = vector.broadcast %40 : f32 to vector<2x17xf32>
    %42 = arith.mulf %4, %41 : vector<2x17xf32>
    %c1_23 = arith.constant 1 : index
    %c1_24 = arith.constant 1 : index
    %43 = memref.load %arg2[%c1_23, %c1_24] : memref<4x6xf32, #tpu.memory_space<smem>>
    %44 = vector.broadcast %43 : f32 to vector<2x17xf32>
    %45 = arith.mulf %9, %44 : vector<2x17xf32>
    %46 = arith.addf %42, %45 : vector<2x17xf32>
    %c2_25 = arith.constant 2 : index
    %c1_26 = arith.constant 1 : index
    %47 = memref.load %arg2[%c2_25, %c1_26] : memref<4x6xf32, #tpu.memory_space<smem>>
    %48 = vector.broadcast %47 : f32 to vector<2x17xf32>
    %49 = arith.mulf %14, %48 : vector<2x17xf32>
    %50 = arith.addf %46, %49 : vector<2x17xf32>
    %c3_27 = arith.constant 3 : index
    %c1_28 = arith.constant 1 : index
    %51 = memref.load %arg2[%c3_27, %c1_28] : memref<4x6xf32, #tpu.memory_space<smem>>
    %52 = vector.broadcast %51 : f32 to vector<2x17xf32>
    %53 = arith.mulf %19, %52 : vector<2x17xf32>
    %54 = arith.addf %50, %53 : vector<2x17xf32>
    %cst_29 = arith.constant dense<0.000000e+00> : vector<17xf32>
    %55 = vector.multi_reduction <add>, %54, %cst_29 [0] : vector<2x17xf32> to vector<17xf32>
    %56 = vector.shape_cast %55 : vector<17xf32> to vector<1x17xf32>
    %57 = arith.mulf %54, %54 : vector<2x17xf32>
    %cst_30 = arith.constant dense<0.000000e+00> : vector<17xf32>
    %58 = vector.multi_reduction <add>, %57, %cst_30 [0] : vector<2x17xf32> to vector<17xf32>
    %59 = vector.shape_cast %58 : vector<17xf32> to vector<1x17xf32>
    %c0_31 = arith.constant 0 : index
    %c2_32 = arith.constant 2 : index
    %60 = memref.load %arg2[%c0_31, %c2_32] : memref<4x6xf32, #tpu.memory_space<smem>>
    %61 = vector.broadcast %60 : f32 to vector<2x17xf32>
    %62 = arith.mulf %4, %61 : vector<2x17xf32>
    %c1_33 = arith.constant 1 : index
    %c2_34 = arith.constant 2 : index
    %63 = memref.load %arg2[%c1_33, %c2_34] : memref<4x6xf32, #tpu.memory_space<smem>>
    %64 = vector.broadcast %63 : f32 to vector<2x17xf32>
    %65 = arith.mulf %9, %64 : vector<2x17xf32>
    %66 = arith.addf %62, %65 : vector<2x17xf32>
    %c2_35 = arith.constant 2 : index
    %c2_36 = arith.constant 2 : index
    %67 = memref.load %arg2[%c2_35, %c2_36] : memref<4x6xf32, #tpu.memory_space<smem>>
    %68 = vector.broadcast %67 : f32 to vector<2x17xf32>
    %69 = arith.mulf %14, %68 : vector<2x17xf32>
    %70 = arith.addf %66, %69 : vector<2x17xf32>
    %c3_37 = arith.constant 3 : index
    %c2_38 = arith.constant 2 : index
    %71 = memref.load %arg2[%c3_37, %c2_38] : memref<4x6xf32, #tpu.memory_space<smem>>
    %72 = vector.broadcast %71 : f32 to vector<2x17xf32>
    %73 = arith.mulf %19, %72 : vector<2x17xf32>
    %74 = arith.addf %70, %73 : vector<2x17xf32>
    %cst_39 = arith.constant dense<0.000000e+00> : vector<17xf32>
    %75 = vector.multi_reduction <add>, %74, %cst_39 [0] : vector<2x17xf32> to vector<17xf32>
    %76 = vector.shape_cast %75 : vector<17xf32> to vector<1x17xf32>
    %77 = arith.mulf %74, %74 : vector<2x17xf32>
    %cst_40 = arith.constant dense<0.000000e+00> : vector<17xf32>
    %78 = vector.multi_reduction <add>, %77, %cst_40 [0] : vector<2x17xf32> to vector<17xf32>
    %79 = vector.shape_cast %78 : vector<17xf32> to vector<1x17xf32>
    %c0_41 = arith.constant 0 : index
    %c3_42 = arith.constant 3 : index
    %80 = memref.load %arg2[%c0_41, %c3_42] : memref<4x6xf32, #tpu.memory_space<smem>>
    %81 = vector.broadcast %80 : f32 to vector<2x17xf32>
    %82 = arith.mulf %4, %81 : vector<2x17xf32>
    %c1_43 = arith.constant 1 : index
    %c3_44 = arith.constant 3 : index
    %83 = memref.load %arg2[%c1_43, %c3_44] : memref<4x6xf32, #tpu.memory_space<smem>>
    %84 = vector.broadcast %83 : f32 to vector<2x17xf32>
    %85 = arith.mulf %9, %84 : vector<2x17xf32>
    %86 = arith.addf %82, %85 : vector<2x17xf32>
    %c2_45 = arith.constant 2 : index
    %c3_46 = arith.constant 3 : index
    %87 = memref.load %arg2[%c2_45, %c3_46] : memref<4x6xf32, #tpu.memory_space<smem>>
    %88 = vector.broadcast %87 : f32 to vector<2x17xf32>
    %89 = arith.mulf %14, %88 : vector<2x17xf32>
    %90 = arith.addf %86, %89 : vector<2x17xf32>
    %c3_47 = arith.constant 3 : index
    %c3_48 = arith.constant 3 : index
    %91 = memref.load %arg2[%c3_47, %c3_48] : memref<4x6xf32, #tpu.memory_space<smem>>
    %92 = vector.broadcast %91 : f32 to vector<2x17xf32>
    %93 = arith.mulf %19, %92 : vector<2x17xf32>
    %94 = arith.addf %90, %93 : vector<2x17xf32>
    %cst_49 = arith.constant dense<0.000000e+00> : vector<17xf32>
    %95 = vector.multi_reduction <add>, %94, %cst_49 [0] : vector<2x17xf32> to vector<17xf32>
    %96 = vector.shape_cast %95 : vector<17xf32> to vector<1x17xf32>
    %97 = arith.mulf %94, %94 : vector<2x17xf32>
    %cst_50 = arith.constant dense<0.000000e+00> : vector<17xf32>
    %98 = vector.multi_reduction <add>, %97, %cst_50 [0] : vector<2x17xf32> to vector<17xf32>
    %99 = vector.shape_cast %98 : vector<17xf32> to vector<1x17xf32>
    %c0_51 = arith.constant 0 : index
    %c4 = arith.constant 4 : index
    %100 = memref.load %arg2[%c0_51, %c4] : memref<4x6xf32, #tpu.memory_space<smem>>
    %101 = vector.broadcast %100 : f32 to vector<2x17xf32>
    %102 = arith.mulf %4, %101 : vector<2x17xf32>
    %c1_52 = arith.constant 1 : index
    %c4_53 = arith.constant 4 : index
    %103 = memref.load %arg2[%c1_52, %c4_53] : memref<4x6xf32, #tpu.memory_space<smem>>
    %104 = vector.broadcast %103 : f32 to vector<2x17xf32>
    %105 = arith.mulf %9, %104 : vector<2x17xf32>
    %106 = arith.addf %102, %105 : vector<2x17xf32>
    %c2_54 = arith.constant 2 : index
    %c4_55 = arith.constant 4 : index
    %107 = memref.load %arg2[%c2_54, %c4_55] : memref<4x6xf32, #tpu.memory_space<smem>>
    %108 = vector.broadcast %107 : f32 to vector<2x17xf32>
    %109 = arith.mulf %14, %108 : vector<2x17xf32>
    %110 = arith.addf %106, %109 : vector<2x17xf32>
    %c3_56 = arith.constant 3 : index
    %c4_57 = arith.constant 4 : index
    %111 = memref.load %arg2[%c3_56, %c4_57] : memref<4x6xf32, #tpu.memory_space<smem>>
    %112 = vector.broadcast %111 : f32 to vector<2x17xf32>
    %113 = arith.mulf %19, %112 : vector<2x17xf32>
    %114 = arith.addf %110, %113 : vector<2x17xf32>
    %cst_58 = arith.constant dense<0.000000e+00> : vector<17xf32>
    %115 = vector.multi_reduction <add>, %114, %cst_58 [0] : vector<2x17xf32> to vector<17xf32>
    %116 = vector.shape_cast %115 : vector<17xf32> to vector<1x17xf32>
    %117 = arith.mulf %114, %114 : vector<2x17xf32>
    %cst_59 = arith.constant dense<0.000000e+00> : vector<17xf32>
    %118 = vector.multi_reduction <add>, %117, %cst_59 [0] : vector<2x17xf32> to vector<17xf32>
    %119 = vector.shape_cast %118 : vector<17xf32> to vector<1x17xf32>
    %c0_60 = arith.constant 0 : index
    %c5 = arith.constant 5 : index
    %120 = memref.load %arg2[%c0_60, %c5] : memref<4x6xf32, #tpu.memory_space<smem>>
    %121 = vector.broadcast %120 : f32 to vector<2x17xf32>
    %122 = arith.mulf %4, %121 : vector<2x17xf32>
    %c1_61 = arith.constant 1 : index
    %c5_62 = arith.constant 5 : index
    %123 = memref.load %arg2[%c1_61, %c5_62] : memref<4x6xf32, #tpu.memory_space<smem>>
    %124 = vector.broadcast %123 : f32 to vector<2x17xf32>
    %125 = arith.mulf %9, %124 : vector<2x17xf32>
    %126 = arith.addf %122, %125 : vector<2x17xf32>
    %c2_63 = arith.constant 2 : index
    %c5_64 = arith.constant 5 : index
    %127 = memref.load %arg2[%c2_63, %c5_64] : memref<4x6xf32, #tpu.memory_space<smem>>
    %128 = vector.broadcast %127 : f32 to vector<2x17xf32>
    %129 = arith.mulf %14, %128 : vector<2x17xf32>
    %130 = arith.addf %126, %129 : vector<2x17xf32>
    %c3_65 = arith.constant 3 : index
    %c5_66 = arith.constant 5 : index
    %131 = memref.load %arg2[%c3_65, %c5_66] : memref<4x6xf32, #tpu.memory_space<smem>>
    %132 = vector.broadcast %131 : f32 to vector<2x17xf32>
    %133 = arith.mulf %19, %132 : vector<2x17xf32>
    %134 = arith.addf %130, %133 : vector<2x17xf32>
    %cst_67 = arith.constant dense<0.000000e+00> : vector<17xf32>
    %135 = vector.multi_reduction <add>, %134, %cst_67 [0] : vector<2x17xf32> to vector<17xf32>
    %136 = vector.shape_cast %135 : vector<17xf32> to vector<1x17xf32>
    %137 = arith.mulf %134, %134 : vector<2x17xf32>
    %cst_68 = arith.constant dense<0.000000e+00> : vector<17xf32>
    %138 = vector.multi_reduction <add>, %137, %cst_68 [0] : vector<2x17xf32> to vector<17xf32>
    %139 = vector.shape_cast %138 : vector<17xf32> to vector<1x17xf32>
    %140 = tpu.concatenate %36, %56, %76, %96, %116, %136, %39, %59, %79, %99, %119, %139 in 0 : vector<1x17xf32>, vector<1x17xf32>, vector<1x17xf32>, vector<1x17xf32>, vector<1x17xf32>, vector<1x17xf32>, vector<1x17xf32>, vector<1x17xf32>, vector<1x17xf32>, vector<1x17xf32>, vector<1x17xf32>, vector<1x17xf32> -> vector<12x17xf32>
    %c0_69 = arith.constant 0 : index
    %c0_70 = arith.constant 0 : index
    %c0_71 = arith.constant 0 : index
    %141 = vector.load %arg3[%c0_69, %c0_70, %c0_71] : memref<1x12x17xf32, #tpu.memory_space<vmem>>, vector<1x12x17xf32>
    %142 = vector.shape_cast %141 : vector<1x12x17xf32> to vector<12x17xf32>
    %143 = vector.shape_cast %140 : vector<12x17xf32> to vector<1x12x17xf32>
    tpu.vector_store %arg3[%c0_69, %c0_70, %c0_71], %143 {strides = array<i32>} : memref<1x12x17xf32, #tpu.memory_space<vmem>>, vector<1x12x17xf32>,
    return
  }
  func.func @transform_0(%arg0: i32) -> (i32, i32, i32) {
    %c0_i32 = arith.constant 0 : i32
    %c0_i32_0 = arith.constant 0 : i32
    %c0_i32_1 = arith.constant 0 : i32
    return %arg0, %c0_i32, %c0_i32_0 : i32, i32, i32
  }
  func.func @transform_1(%arg0: i32) -> (i32, i32) {
    %c0_i32 = arith.constant 0 : i32
    %c0_i32_0 = arith.constant 0 : i32
    %c0_i32_1 = arith.constant 0 : i32
    return %c0_i32, %c0_i32_0 : i32, i32
  }
  func.func @transform_2(%arg0: i32) -> (i32, i32, i32) {
    %c0_i32 = arith.constant 0 : i32
    %c0_i32_0 = arith.constant 0 : i32
    %c0_i32_1 = arith.constant 0 : i32
    return %arg0, %c0_i32, %c0_i32_0 : i32, i32, i32
  }
}

</mosaic_0001>

<bundles_post_ra>
// kernel: coord_att.2
= control target key start
LH: loop header
LB: loop body
LE: loop exit
PB: predicated region body
PF: predicated region fallthrough
CT: control target
= control target key end

     0   :  { %7 = vsyncpa [#allocation3], 0  ;;  %s495_s0 = inlined_call_operand.vmem [shape: f32[2,4,16], index: 0, kind: input, shape index: {}]   ;;  %s496_s1 = inlined_call_operand.vmem [shape: f32[4,6], index: 1, kind: input, shape index: {}]   ;;  %s497_s2 = inlined_call_operand.vmem [shape: f32[1,12,17], index: 2, kind: output, shape index: {}]  }
   0x1   :  { %s16_s11 = sshll.u32 %s496_s1, 4  ;;  %s17_s11 = int_to_ptr.vmem [resolvable:$true] %s16_s11 }
   0x2   :  { %s302_s12 = scalar_lea.vmem %s17_s11, 64  ;;  %p307_p1 = scmp.lt.s32.totalorder %s17_s11, %s17_s11 }
   0x3   :  { %p303_p0 = scmp.ne.s32.totalorder %s17_s11, %s302_s12  ;;  %p308_p2 = scmp.lt.s32.totalorder %s302_s12, %s302_s12 }
   0x5   :  { %p309_p3 = por %p308_p2, %p307_p1 }
   0x7   :  { %p310_p4 = pnand %p309_p3, %p303_p0 }
   0x9   :  { %313 = shalt.err (!%p310_p4)
}
   0xa   :  { %s316_s13 = smov [#allocation2]  }
   0xb   :  { %19 = dma.vmem_to_smem %s17_s11, 64, %s316_s13, [#allocation3]  }
   0xc   :  { %314 = dma.done.wait [#allocation3], 64  }
   0xd   :  { %315 = vsyncadd [#allocation3], 4294967232 }
   0xe   :  { %23 = sfence }
   0xf   :  { %v24_v0 = vld [vmem:[%s495_s0] sm:$0x1]  ;;  %v25_v1 = vld [vmem:[%s495_s0 + $0x4] sm:$0x1]  ;;  %vm29_vm0 = vcmask 1041409   ;;  %vm32_vm1 = vcmask 123904  }
  0x10   :  { %v28_v2 = vrot.slane %v25_v1, 7  ;;  %v49_v3 = vld [vmem:[%s495_s0 + $0x2] sm:$0x1]  ;;  %v50_v4 = vld [vmem:[%s495_s0 + $0x6] sm:$0x1]  ;;  %s375_s29 = sld [smem:[#allocation2 + $0x1]] }
  0x11   :  { %v53_v5 = vrot.slane %v50_v4, 7  ;;  %v38_v6 = vld [vmem:[%s495_s0 + $0x1] sm:$0x1]  ;;  %v39_v7 = vld [vmem:[%s495_s0 + $0x5] sm:$0x1]  ;;  %s377_s30 = sld [smem:[#allocation2 + $0x2]] }
  0x12   :  { %v30_v8 = vsel %vm29_vm0, %v28_v2, %v24_v0  ;;  %v42_v9 = vrot.slane %v39_v7, 7  ;;  %v60_v10 = vld [vmem:[%s495_s0 + $0x3] sm:$0x1]  ;;  %v61_v11 = vld [vmem:[%s495_s0 + $0x7] sm:$0x1]  ;;  %s373_s0 = sld [smem:[#allocation2]] }
  0x13   :  { %v33_v12 = vsel %vm32_vm1, %v30_v8, -inf  ;;  %v54_v13 = vsel %vm29_vm0, %v53_v5, %v49_v3  ;;  %v64_v14 = vrot.slane %v61_v11, 7  ;;  %s379_s3 = sld [smem:[#allocation2 + $0x3]]  ;;  %s381_s4 = sld [smem:[#allocation2 + $0x4]]  ;;  %vm36_vm2 = vcmask 130048  }
  0x14   :  { %34 = vmax.xlane.f32.xlu0 %v33_v12  ;;  %v56_v15 = vsel %vm32_vm1, %v54_v13, -inf  ;;  %v364_v16 = vsel %vm29_vm0, %v42_v9, %v38_v6  ;;  %s383_s5 = sld [smem:[#allocation2 + $0x5]]  ;;  %s385_s6 = sld [smem:[#allocation2 + $0x100]]  ;;  %vm86_vm3 = vcmask 132096   ;;  %vm252_vm4 = vcmask 1040384  }
  0x15   :  { %57 = vmax.xlane.f32.xlu1 %v56_v15  ;;  %v45_v17 = vsel %vm32_vm1, %v364_v16, -inf  ;;  %v369_v18 = vsel %vm29_vm0, %v64_v14, %v60_v10  ;;  %s387_s7 = sld [smem:[#allocation2 + $0x101]]  ;;  %s389_s8 = sld [smem:[#allocation2 + $0x102]]  ;;  %vm254_vm5 = vcmask 1041408   ;;  %vm256_vm6 = vcmask 1042432  }
  0x16   :  { %v67_v19 = vsel %vm32_vm1, %v369_v18, -inf  ;;  %s391_s9 = sld [smem:[#allocation2 + $0x103]]  ;;  %s393_s10 = sld [smem:[#allocation2 + $0x104]]  ;;  %v103_v21 = vstv %s375_s29  ;;  %vm258_vm7 = vcmask 1043456   ;;  %vm260_vm8 = vcmask 1044480  }
  0x17   :  { %s395_s11 = sld [smem:[#allocation2 + $0x105]]  ;;  %s397_s12 = sld [smem:[#allocation2 + $0x80]]  ;;  %v133_v22 = vstv %s377_s30  ;;  %vm262_vm9 = vcmask 1045504   ;;  %vm264_vm10 = vcmask 1046528   ;;  %vm269_vm11 = vcmask 138240  }
  0x18   :  { %46 = vmax.xlane.f32.xlu0 %v45_v17  ;;  %s399_s13 = sld [smem:[#allocation2 + $0x81]]  ;;  %s401_s14 = sld [smem:[#allocation2 + $0x82]]  ;;  %v72_v20 = vstv %s373_s0  ;;  %vm271_vm12 = vcmask 134144  }
  0x19   :  { %68 = vmax.xlane.f32.xlu1 %v67_v19  ;;  %s403_s15 = sld [smem:[#allocation2 + $0x83]]  ;;  %s405_s16 = sld [smem:[#allocation2 + $0x84]]  ;;  %v163_v23 = vstv %s379_s3  ;;  %v193_v24 = vstv %s381_s4 }
  0x1a   :  { %s407_s17 = sld [smem:[#allocation2 + $0x85]]  ;;  %s409_s1 = sld [smem:[#allocation2 + $0x180]]  ;;  %v223_v25 = vstv %s383_s5  ;;  %v79_v27 = vstv %s385_s6 }
  0x1b   :  { %s411_s18 = sld [smem:[#allocation2 + $0x181]]  ;;  %s413_s19 = sld [smem:[#allocation2 + $0x182]]  ;;  %v110_v28 = vstv %s387_s7  ;;  %v140_v29 = vstv %s389_s8 }
  0x1c   :  { %s415_s20 = sld [smem:[#allocation2 + $0x183]]  ;;  %v170_v31 = vstv %s391_s9  ;;  %v200_v32 = vstv %s393_s10  ;;  %s438_s21 = sld [smem:[#allocation2 + $0x184]] }
  0x1d   :  { %v230_v33 = vstv %s395_s11  ;;  %v75_v35 = vstv %s397_s12  ;;  %s447_s22 = sld [smem:[#allocation2 + $0x185]] }
  0x1e   :  { %v106_v36 = vstv %s399_s13  ;;  %v136_v37 = vstv %s401_s14 }
  0x1f   :  { %v166_v38 = vstv %s403_s15  ;;  %v196_v39 = vstv %s405_s16 }
  0x20   :  { %v226_v40 = vstv %s407_s17  ;;  %v83_v41 = vstv %s409_s1 }
  0x21   :  { %v114_v42 = vstv %s411_s18  ;;  %v144_v46 = vstv %s413_s19 }
  0x22   :  { %v174_v47 = vstv %s415_s20  ;;  %v204_v10 = vstv %s438_s21 }
  0x23   :  { %v234_v19 = vstv %s447_s22 }
  0xa1   :  { %v35_v26 = vpop.xlane.xlu0 %34 }
  0xa2   :  { %v37_v30 = vsel %vm36_vm2, %v30_v8, %v35_v26  ;;  %v58_v34 = vpop.xlane.xlu1 %57 }
  0xa3   :  { %v73_v43 = vmul.f32 %v72_v20, %v37_v30  ;;  %v441_v44 = vsel %vm36_vm2, %v54_v13, %v58_v34  ;;  %v104_v48 = vmul.f32 %v103_v21, %v37_v30  ;;  %v134_v49 = vmul.f32 %v133_v22, %v37_v30 }
  0xa4   :  { %v164_v50 = vmul.f32 %v163_v23, %v37_v30  ;;  %v80_v57 = vmul.f32 %v79_v27, %v441_v44  ;;  %v111_v58 = vmul.f32 %v110_v28, %v441_v44  ;;  %v141_v59 = vmul.f32 %v140_v29, %v441_v44 }
  0xa5   :  { %v47_v45 = vpop.xlane.xlu0 %46  ;;  %v171_v1 = vmul.f32 %v170_v31, %v441_v44  ;;  %v194_v9 = vmul.f32 %v193_v24, %v37_v30  ;;  %v224_v17 = vmul.f32 %v223_v25, %v37_v30  ;;  %v201_v31 = vmul.f32 %v200_v32, %v441_v44 }
  0xa6   :  { %v48_v51 = vsel %vm36_vm2, %v364_v16, %v47_v45  ;;  %v69_v52 = vpop.xlane.xlu1 %68 }
  0xa7   :  { %v76_v53 = vmul.f32 %v75_v35, %v48_v51  ;;  %v107_v54 = vmul.f32 %v106_v36, %v48_v51  ;;  %v137_v55 = vmul.f32 %v136_v37, %v48_v51  ;;  %v167_v56 = vmul.f32 %v166_v38, %v48_v51 }
  0xa8   :  { %v454_v60 = vsel %vm36_vm2, %v369_v18, %v69_v52  ;;  %v197_v2 = vmul.f32 %v196_v39, %v48_v51  ;;  %v227_v13 = vmul.f32 %v226_v40, %v48_v51 }
  0xa9   :  { %v77_v61 = vadd.f32 %v76_v53, %v73_v43  ;;  %v108_v62 = vadd.f32 %v107_v54, %v104_v48  ;;  %v138_v63 = vadd.f32 %v137_v55, %v134_v49  ;;  %v168_v0 = vadd.f32 %v167_v56, %v164_v50 }
  0xaa   :  { %v84_v3 = vmul.f32 %v83_v41, %v454_v60  ;;  %v115_v4 = vmul.f32 %v114_v42, %v454_v60  ;;  %v145_v8 = vmul.f32 %v144_v46, %v454_v60  ;;  %v175_v12 = vmul.f32 %v174_v47, %v454_v60 }
  0xab   :  { %v81_v5 = vadd.f32 %v80_v57, %v77_v61  ;;  %v112_v6 = vadd.f32 %v111_v58, %v108_v62  ;;  %v142_v7 = vadd.f32 %v141_v59, %v138_v63  ;;  %v172_v11 = vadd.f32 %v171_v1, %v168_v0 }
  0xac   :  { %v198_v18 = vadd.f32 %v197_v2, %v194_v9  ;;  %v228_v34 = vadd.f32 %v227_v13, %v224_v17  ;;  %v205_v32 = vmul.f32 %v204_v10, %v454_v60  ;;  %v231_v59 = vmul.f32 %v230_v33, %v441_v44 }
  0xad   :  { %v85_v14 = vadd.f32 %v84_v3, %v81_v5  ;;  %v116_v15 = vadd.f32 %v115_v4, %v112_v6  ;;  %v146_v16 = vadd.f32 %v145_v8, %v142_v7  ;;  %v176_v20 = vadd.f32 %v175_v12, %v172_v11 }
  0xae   :  { %v202_v46 = vadd.f32 %v201_v31, %v198_v18  ;;  %v232_v4 = vadd.f32 %v231_v59, %v228_v34  ;;  %v235_v5 = vmul.f32 %v234_v19, %v454_v60 }
  0xaf   :  { %v87_v21 = vsel %vm86_vm3, %v85_v14, 0.0  ;;  %v94_v22 = vmul.f32 %v85_v14, %v85_v14  ;;  %v117_v23 = vsel %vm86_vm3, %v116_v15, 0.0  ;;  %v124_v26 = vmul.f32 %v116_v15, %v116_v15 }
  0xb0   :  { %v88_v24 = vrot.slane %v87_v21, 4  ;;  %v118_v27 = vrot.slane %v117_v23, 4  ;;  %v147_v28 = vsel %vm86_vm3, %v146_v16, 0.0  ;;  %v154_v29 = vmul.f32 %v146_v16, %v146_v16 }
  0xb1   :  { %v148_v35 = vrot.slane %v147_v28, 4  ;;  %v177_v25 = vsel %vm86_vm3, %v176_v20, 0.0  ;;  %v95_v36 = vsel %vm86_vm3, %v94_v22, 0.0  ;;  %v125_v38 = vsel %vm86_vm3, %v124_v26, 0.0 }
  0xb2   :  { %v89_v30 = vadd.f32 %v88_v24, %v87_v21  ;;  %v119_v37 = vadd.f32 %v118_v27, %v117_v23  ;;  %v155_v40 = vsel %vm86_vm3, %v154_v29, 0.0  ;;  %v178_v41 = vrot.slane %v177_v25, 4 }
  0xb3   :  { %v149_v39 = vadd.f32 %v148_v35, %v147_v28  ;;  %v184_v42 = vmul.f32 %v176_v20, %v176_v20  ;;  %v156_v48 = vrot.slane %v155_v40, 4  ;;  %v96_v52 = vrot.slane %v95_v36, 4 }
  0xb4   :  { %v90_v43 = vrot.slane %v89_v30, 2  ;;  %v120_v45 = vrot.slane %v119_v37, 2  ;;  %v179_v49 = vadd.f32 %v178_v41, %v177_v25  ;;  %v126_v54 = vrot.slane %v125_v38, 4 }
  0xb5   :  { %v150_v47 = vrot.slane %v149_v39, 2  ;;  %v185_v50 = vsel %vm86_vm3, %v184_v42, 0.0  ;;  %v157_v56 = vadd.f32 %v156_v48, %v155_v40  ;;  %v206_v61 = vadd.f32 %v205_v32, %v202_v46 }
  0xb6   :  { %v91_v51 = vadd.f32 %v90_v43, %v89_v30  ;;  %v121_v53 = vadd.f32 %v120_v45, %v119_v37  ;;  %v180_v57 = vrot.slane %v179_v49, 2  ;;  %v186_v58 = vrot.slane %v185_v50, 4 }
  0xb7   :  { %v151_v55 = vadd.f32 %v150_v47, %v149_v39  ;;  %v158_v0 = vrot.slane %v157_v56, 2  ;;  %v97_v2 = vadd.f32 %v96_v52, %v95_v36  ;;  %v127_v3 = vadd.f32 %v126_v54, %v125_v38 }
  0xb8   :  { %v92_v62 = vrot.slane %v91_v51, 1  ;;  %v122_v63 = vrot.slane %v121_v53, 1  ;;  %v187_v1 = vadd.f32 %v186_v58, %v185_v50  ;;  %v181_v7 = vadd.f32 %v180_v57, %v179_v49 }
  0xb9   :  { %v152_v6 = vrot.slane %v151_v55, 1  ;;  %v159_v9 = vadd.f32 %v158_v0, %v157_v56  ;;  %v207_v10 = vsel %vm86_vm3, %v206_v61, 0.0  ;;  %v214_v11 = vmul.f32 %v206_v61, %v206_v61 }
  0xba   :  { %v188_v8 = vrot.slane %v187_v1, 2  ;;  %v93_v33 = vadd.f32 %v92_v62, %v91_v51  ;;  %v123_v44 = vadd.f32 %v122_v63, %v121_v53  ;;  %v208_v13 = vrot.slane %v207_v10, 4 }
  0xbb   :  { %v98_v14 = vrot.slane %v97_v2, 2  ;;  %v128_v15 = vrot.slane %v127_v3, 2  ;;  %v215_v16 = vsel %vm86_vm3, %v214_v11, 0.0  ;;  %v236_v17 = vadd.f32 %v235_v5, %v232_v4 }
  0xbc   :  { %v189_v12 = vadd.f32 %v188_v8, %v187_v1  ;;  %v153_v18 = vadd.f32 %v152_v6, %v151_v55  ;;  %v182_v60 = vrot.slane %v181_v7, 1  ;;  %v209_v19 = vadd.f32 %v208_v13, %v207_v10 }
  0xbd   :  { %v216_v20 = vrot.slane %v215_v16, 4  ;;  %v160_v21 = vrot.slane %v159_v9, 1  ;;  %v237_v23 = vsel %vm86_vm3, %v236_v17, 0.0  ;;  %v244_v26 = vmul.f32 %v236_v17, %v236_v17 }
  0xbe   :  { %v190_v22 = vrot.slane %v189_v12, 1  ;;  %v210_v24 = vrot.slane %v209_v19, 2  ;;  %v238_v28 = vrot.slane %v237_v23, 4  ;;  %v253_v29 = vsel %vm252_vm4, %v93_v33, %v123_v44 }
  0xbf   :  { %v217_v27 = vadd.f32 %v216_v20, %v215_v16  ;;  %v99_v31 = vadd.f32 %v98_v14, %v97_v2  ;;  %v129_v34 = vadd.f32 %v128_v15, %v127_v3  ;;  %v245_v35 = vsel %vm86_vm3, %v244_v26, 0.0 }
  0xc0   :  { %v211_v25 = vadd.f32 %v210_v24, %v209_v19  ;;  %v239_v36 = vadd.f32 %v238_v28, %v237_v23  ;;  %v246_v37 = vrot.slane %v245_v35, 4  ;;  %v161_v38 = vadd.f32 %v160_v21, %v159_v9 }
  0xc1   :  { %v218_v30 = vrot.slane %v217_v27, 2  ;;  %v183_v39 = vadd.f32 %v182_v60, %v181_v7  ;;  %v191_v40 = vadd.f32 %v190_v22, %v189_v12  ;;  %v255_v41 = vsel %vm254_vm5, %v253_v29, %v153_v18 }
  0xc2   :  { %v212_v42 = vrot.slane %v211_v25, 1  ;;  %v240_v45 = vrot.slane %v239_v36, 2  ;;  %v247_v46 = vadd.f32 %v246_v37, %v245_v35  ;;  %v100_v50 = vrot.slane %v99_v31, 1 }
  0xc3   :  { %v219_v43 = vadd.f32 %v218_v30, %v217_v27  ;;  %v257_v49 = vsel %vm256_vm6, %v255_v41, %v183_v39  ;;  %v130_v51 = vrot.slane %v129_v34, 1  ;;  %v266_v56 = vsel %vm252_vm4, %v161_v38, %v191_v40 }
  0xc4   :  { %v241_v47 = vadd.f32 %v240_v45, %v239_v36  ;;  %v248_v48 = vrot.slane %v247_v46, 2  ;;  %v213_v52 = vadd.f32 %v212_v42, %v211_v25  ;;  %v101_v61 = vadd.f32 %v100_v50, %v99_v31 }
  0xc5   :  { %v220_v32 = vrot.slane %v219_v43, 1  ;;  %v131_v63 = vadd.f32 %v130_v51, %v129_v34 }
  0xc6   :  { %v242_v54 = vrot.slane %v241_v47, 1  ;;  %v249_v55 = vadd.f32 %v248_v48, %v247_v46  ;;  %v259_v57 = vsel %vm258_vm7, %v257_v49, %v213_v52 }
  0xc7   :  { %v221_v53 = vadd.f32 %v220_v32, %v219_v43 }
  0xc8   :  { %v243_v58 = vadd.f32 %v242_v54, %v241_v47  ;;  %v250_v59 = vrot.slane %v249_v55, 1 }
  0xc9   :  { %v267_v62 = vsel %vm254_vm5, %v266_v56, %v221_v53 }
  0xca   :  { %v251_v0 = vadd.f32 %v250_v59, %v249_v55  ;;  %v261_v1 = vsel %vm260_vm8, %v259_v57, %v243_v58 }
  0xcb   :  { %v263_v2 = vsel %vm262_vm9, %v261_v1, %v101_v61 }
  0xcc   :  { %v265_v3 = vsel %vm264_vm10, %v263_v2, %v131_v63  ;;  %v268_v4 = vsel %vm256_vm6, %v267_v62, %v251_v0 }
  0xcd   :  { %270 = vst.msk [vmem:[%s497_s2] sm:$0xff] %vm269_vm11, %v265_v3 }
  0xce   :  { %272 = vst.msk [vmem:[%s497_s2 + $0x8] sm:$0xf] %vm271_vm12, %v268_v4 }
  0xcf   :  { %277 = vsyncpa [#allocation3], 1 }

// kernel: coord_att.3
= control target key start
LH: loop header
LB: loop body
LE: loop exit
PB: predicated region body
PF: predicated region fallthrough
CT: control target
= control target key end

     0   :  { %s1183_s0 = inlined_call_operand.vmem [shape: f32[2,4,16], index: 0, kind: input, shape index: {}]   ;;  %s1184_s1 = inlined_call_operand.vmem [shape: f32[13,6], index: 1, kind: input, shape index: {}]   ;;  %s1185_s2 = inlined_call_operand.hbm [shape: f32[2,4,16], index: 2, kind: output, shape index: {}]  }
   0x1   :  { %1208 = sst [smem:[#allocation26_spill]] %s1185_s2 }
   0x2   :  { %7 = vsyncpa [#allocation4], 0 }
   0x3   :  { %8 = vsyncpa [#allocation3], 0  ;;  %s16_s11 = sshll.u32 %s1184_s1, 4  ;;  %s17_s11 = int_to_ptr.vmem [resolvable:$true] %s16_s11 }
   0x4   :  { %s570_s12 = scalar_lea.vmem %s17_s11, 256  ;;  %p575_p1 = scmp.lt.s32.totalorder %s17_s11, %s17_s11 }
   0x5   :  { %p571_p0 = scmp.ne.s32.totalorder %s17_s11, %s570_s12  ;;  %p576_p2 = scmp.lt.s32.totalorder %s570_s12, %s570_s12 }
   0x7   :  { %p577_p3 = por %p576_p2, %p575_p1 }
   0x9   :  { %p578_p4 = pnand %p577_p3, %p571_p0 }
   0xb   :  { %581 = shalt.err (!%p578_p4)
}
   0xc   :  { %s608_s13 = smov [#allocation2]   ;;  %s609_s14 = smov 128  }
   0xd   :  { %s610_s15 = smov 8  }
   0xe   :  { %22 = dma.vmem_to_smem %s17_s11, 256, %s608_s13, [#allocation4], %s609_s14, %s609_s14, %s610_s15  }
   0xf   :  { %604 = dma.done.wait [#allocation4], 256  }
  0x10   :  { %605 = vsyncadd [#allocation4], 4294967040 }
  0x11   :  { %26 = sfence }
  0x12   :  { %s632_s16 = sld [smem:[#allocation2]]  ;;  %v643_v0 = vld [vmem:[%s1183_s0] sm:$0x1]  ;;  %v652_v1 = vld [vmem:[%s1183_s0 + $0x1] sm:$0x1]  ;;  %s654_s25 = sld [smem:[#allocation2 + $0x1]] }
  0x13   :  { %s634_s17 = sld [smem:[#allocation2 + $0x80]]  ;;  %s656_s26 = sld [smem:[#allocation2 + $0x81]]  ;;  %v661_v2 = vld [vmem:[%s1183_s0 + $0x2] sm:$0x1]  ;;  %v670_v3 = vld [vmem:[%s1183_s0 + $0x3] sm:$0x1] }
  0x14   :  { %s636_s1 = sld [smem:[#allocation2 + $0x100]]  ;;  %s663_s29 = sld [smem:[#allocation2 + $0x101]]  ;;  %v685_v6 = vld [vmem:[%s1183_s0 + $0x4] sm:$0x1]  ;;  %vm279_vm0 = vcmask 122880  }
  0x15   :  { %s638_s18 = sld [smem:[#allocation2 + $0x180]]  ;;  %s665_s30 = sld [smem:[#allocation2 + $0x181]] }
  0x16   :  { %s645_s21 = sld [smem:[#allocation2 + $0x500]]  ;;  %s672_s5 = sld [smem:[#allocation2 + $0x501]] }
  0x17   :  { %s647_s22 = sld [smem:[#allocation2 + $0x580]]  ;;  %s674_s6 = sld [smem:[#allocation2 + $0x581]] }
  0x18   :  { %v36_v4 = vstv %s632_s16  ;;  %s678_s7 = sld [smem:[#allocation2 + $0x2]]  ;;  %v68_v16 = vstv %s654_s25  ;;  %s711_s15 = sld [smem:[#allocation2 + $0x3]] }
  0x19   :  { %v40_v5 = vstv %s634_s17  ;;  %s680_s8 = sld [smem:[#allocation2 + $0x82]]  ;;  %v37_v7 = vmul.f32 %v36_v4, %v643_v0  ;;  %v72_v17 = vstv %s656_s26  ;;  %s713_s16 = sld [smem:[#allocation2 + $0x83]]  ;;  %v716_v18 = vmul.f32 %v36_v4, %v685_v6 }
  0x1a   :  { %v41_v8 = vmul.f32 %v40_v5, %v652_v1  ;;  %v46_v9 = vstv %s636_s1  ;;  %s693_s11 = sld [smem:[#allocation2 + $0x102]]  ;;  %v69_v19 = vmul.f32 %v68_v16, %v643_v0  ;;  %v73_v20 = vmul.f32 %v72_v17, %v652_v1  ;;  %s726_s19 = sld [smem:[#allocation2 + $0x103]] }
  0x1b   :  { %v52_v10 = vstv %s638_s18  ;;  %s695_s12 = sld [smem:[#allocation2 + $0x182]]  ;;  %v47_v11 = vmul.f32 %v46_v9, %v661_v2  ;;  %v78_v21 = vstv %s663_s29  ;;  %v84_v22 = vstv %s665_s30  ;;  %s728_s20 = sld [smem:[#allocation2 + $0x183]] }
  0x1c   :  { %1209 = sst [smem:[#allocation8_spill]] %s645_s21  ;;  %v53_v12 = vmul.f32 %v52_v10, %v670_v3  ;;  %v58_v13 = vstv %s645_s21  ;;  %s705_s13 = sld [smem:[#allocation2 + $0x502]]  ;;  %v43_v15 = vadd.f32 %v41_v8, %v37_v7  ;;  %v79_v24 = vmul.f32 %v78_v21, %v661_v2 }
  0x1d   :  { %1210 = sst [smem:[#allocation9_spill]] %s647_s22  ;;  %v62_v14 = vstv %s647_s22  ;;  %s707_s14 = sld [smem:[#allocation2 + $0x582]]  ;;  %v85_v25 = vmul.f32 %v84_v22, %v670_v3  ;;  %v90_v26 = vstv %s672_s5  ;;  %v75_v27 = vadd.f32 %v73_v20, %v69_v19 }
  0x1e   :  { %1211 = sst [smem:[#allocation10_spill]] %s672_s5  ;;  %v49_v23 = vadd.f32 %v47_v11, %v43_v15  ;;  %s737_s23 = sld [smem:[#allocation2 + $0x503]]  ;;  %v94_v28 = vstv %s674_s6  ;;  %v100_v29 = vstv %s678_s7  ;;  %v132_v44 = vstv %s711_s15 }
  0x1f   :  { %1212 = sst [smem:[#allocation11_spill]] %s674_s6  ;;  %v104_v30 = vstv %s680_s8  ;;  %s744_s27 = sld [smem:[#allocation2 + $0x4]]  ;;  %v101_v32 = vmul.f32 %v100_v29, %v643_v0  ;;  %v81_v35 = vadd.f32 %v79_v24, %v75_v27  ;;  %v136_v45 = vstv %s713_s16 }
  0x20   :  { %1216 = sst [smem:[#allocation15_spill]] %s711_s15  ;;  %s739_s24 = sld [smem:[#allocation2 + $0x583]]  ;;  %v55_v31 = vadd.f32 %v53_v12, %v49_v23  ;;  %v105_v33 = vmul.f32 %v104_v30, %v652_v1  ;;  %v110_v34 = vstv %s693_s11  ;;  %v142_v46 = vstv %s726_s19 }
  0x21   :  { %1213 = sst [smem:[#allocation12_spill]] %s695_s12  ;;  %v111_v36 = vmul.f32 %v110_v34, %v661_v2  ;;  %v116_v37 = vstv %s695_s12  ;;  %v87_v43 = vadd.f32 %v85_v25, %v81_v35  ;;  %s777_s2 = sld [smem:[#allocation2 + $0x5]]  ;;  %v133_v49 = vmul.f32 %v132_v44, %v643_v0 }
  0x22   :  { %1214 = sst [smem:[#allocation13_spill]] %s705_s13  ;;  %s746_s28 = sld [smem:[#allocation2 + $0x84]]  ;;  %v122_v38 = vstv %s705_s13  ;;  %v59_v39 = vmul.f32 %v58_v13, %v55_v31  ;;  %v107_v40 = vadd.f32 %v105_v33, %v101_v32  ;;  %v117_v41 = vmul.f32 %v116_v37, %v670_v3 }
  0x23   :  { %1215 = sst [smem:[#allocation14_spill]] %s707_s14  ;;  %s755_s3 = sld [smem:[#allocation2 + $0x104]]  ;;  %v126_v42 = vstv %s707_s14  ;;  %v137_v50 = vmul.f32 %v136_v45, %v652_v1  ;;  %v91_v51 = vmul.f32 %v90_v26, %v87_v43  ;;  %v143_v52 = vmul.f32 %v142_v46, %v661_v2 }
  0x24   :  { %1217 = sst [smem:[#allocation16_spill]] %s713_s16  ;;  %s762_s4 = sld [smem:[#allocation2 + $0x184]]  ;;  %v63_v47 = vadd.f32 %v62_v14, %v59_v39  ;;  %v113_v48 = vadd.f32 %v111_v36, %v107_v40  ;;  %v148_v53 = vstv %s728_s20  ;;  %v154_v54 = vstv %s737_s23 }
  0x25   :  { %1218 = sst [smem:[#allocation17_spill]] %s726_s19  ;;  %s764_s9 = sld [smem:[#allocation2 + $0x504]]  ;;  %v139_v57 = vadd.f32 %v137_v50, %v133_v49  ;;  %v149_v58 = vmul.f32 %v148_v53, %v670_v3  ;;  %v95_v59 = vadd.f32 %v94_v28, %v91_v51  ;;  %v164_v61 = vstv %s744_s27 }
  0x26   :  { %1219 = sst [smem:[#allocation18_spill]] %s728_s20  ;;  %s772_s10 = sld [smem:[#allocation2 + $0x584]]  ;;  %v802_v55 = vmax.f32 %v63_v47, 0.0  ;;  %v119_v56 = vadd.f32 %v117_v41, %v113_v48  ;;  %v1206_v60 = vstv %s739_s24  ;;  %v165_v7 = vmul.f32 %v164_v61, %v643_v0 }
  0x27   :  { %1220 = sst [smem:[#allocation19_spill]] %s737_s23  ;;  %s779_s21 = sld [smem:[#allocation2 + $0x85]]  ;;  %v145_v4 = vadd.f32 %v143_v52, %v139_v57  ;;  %v828_v11 = vmax.f32 %v95_v59, 0.0  ;;  %v196_v32 = vstv %s777_s2 }
  0x28   :  { %1221 = sst [smem:[#allocation20_spill]] %s739_s24  ;;  %s789_s12 = sld [smem:[#allocation2 + $0x105]]  ;;  %v168_v62 = vstv %s746_s28  ;;  %v123_v63 = vmul.f32 %v122_v38, %v119_v56  ;;  %v197_v40 = vmul.f32 %v196_v32, %v643_v0 }
  0x29   :  { %1222 = sst [smem:[#allocation21_spill]] %s746_s28  ;;  %s814_s19 = sld [smem:[#allocation2 + $0x200]]  ;;  %v169_v8 = vmul.f32 %v168_v62, %v652_v1  ;;  %v174_v12 = vstv %s755_s3  ;;  %v151_v23 = vadd.f32 %v149_v58, %v145_v4 }
  0x2a   :  { %s798_s22 = sld [smem:[#allocation2 + $0x185]]  ;;  %s816_s16 = sld [smem:[#allocation2 + $0x280]]  ;;  %v180_v15 = vstv %s762_s4  ;;  %v127_v20 = vadd.f32 %v126_v42, %v123_v63  ;;  %v175_v25 = vmul.f32 %v174_v12, %v661_v2 }
  0x2b   :  { %1223 = sst [smem:[#allocation22_spill]] %s764_s9  ;;  %s800_s15 = sld [smem:[#allocation2 + $0x505]]  ;;  %v1205_v19 = vstv %s764_s9  ;;  %v171_v24 = vadd.f32 %v169_v8, %v165_v7  ;;  %v181_v27 = vmul.f32 %v180_v15, %v670_v3  ;;  %v155_v36 = vmul.f32 %v154_v54, %v151_v23  ;;  %v894_v23 = vld [vmem:[%s1183_s0 + $0x6] sm:$0x1] }
  0x2c   :  { %s807_s5 = sld [smem:[#allocation2 + $0x585]]  ;;  %s826_s6 = sld [smem:[#allocation2 + $0x300]]  ;;  %v190_v31 = vstv %s772_s10  ;;  %v852_v35 = vmax.f32 %v127_v20, 0.0  ;;  %v889_v20 = vld [vmem:[%s1183_s0 + $0x5] sm:$0x1] }
  0x2d   :  { %s833_s13 = sld [smem:[#allocation2 + $0x380]]  ;;  %v200_v33 = vstv %s779_s21  ;;  %v177_v39 = vadd.f32 %v175_v25, %v171_v24  ;;  %v159_v49 = vadd.f32 %v1206_v60, %v155_v36  ;;  %v42_v60 = vmul.f32 %v40_v5, %v889_v20  ;;  %s979_s7 = sld [smem:[#allocation2 + $0x201]] }
  0x2e   :  { %1224 = sst [smem:[#allocation23_spill]] %s789_s12  ;;  %s835_s20 = sld [smem:[#allocation2 + $0x400]]  ;;  %v201_v41 = vmul.f32 %v200_v33, %v652_v1  ;;  %v206_v43 = vstv %s789_s12  ;;  %v70_v5 = vmul.f32 %v68_v16, %v685_v6 }
  0x2f   :  { %s848_s14 = sld [smem:[#allocation2 + $0x480]]  ;;  %v183_v50 = vadd.f32 %v181_v27, %v177_v39  ;;  %v207_v51 = vmul.f32 %v206_v43, %v661_v2  ;;  %v228_v58 = vstv %s814_s19  ;;  %v876_v63 = vmax.f32 %v159_v49, 0.0  ;;  %v902_v39 = vld [vmem:[%s1183_s0 + $0x7] sm:$0x1]  ;;  %s996_s23 = sld [smem:[#allocation2 + $0x301]] }
  0x30   :  { %1225 = sst [smem:[#allocation24_spill]] %s798_s22  ;;  %v212_v47 = vstv %s798_s22  ;;  %v203_v56 = vadd.f32 %v201_v41, %v197_v40  ;;  %v1207_v59 = vstv %s816_s16  ;;  %v229_v7 = vmul.f32 %v228_v58, %v802_v55  ;;  %s1010_s4 = sld [smem:[#allocation2 + $0x381]] }
  0x31   :  { %1226 = sst [smem:[#allocation25_spill]] %s816_s16  ;;  %s850_s28 = sld [smem:[#allocation2 + $0x600]]  ;;  %v218_v48 = vstv %s800_s15  ;;  %v213_v52 = vmul.f32 %v212_v47, %v670_v3  ;;  %v187_v4 = vmul.f32 %v1205_v19, %v183_v50  ;;  %v233_v8 = vmul.f32 %v1207_v59, %v828_v11 }
  0x32   :  { %v222_v57 = vstv %s807_s5  ;;  %v209_v24 = vadd.f32 %v207_v51, %v203_v56  ;;  %v238_v25 = vstv %s826_s6  ;;  %s994_s16 = sld [smem:[#allocation2 + $0x281]]  ;;  %s1243_s2 = sld [smem:[#allocation20_spill]] }
  0x33   :  { %v244_v27 = vstv %s833_s13  ;;  %v191_v40 = vadd.f32 %v190_v31, %v187_v4  ;;  %v235_v41 = vadd.f32 %v233_v8, %v229_v7  ;;  %v239_v49 = vmul.f32 %v238_v25, %v852_v35  ;;  %s1012_s9 = sld [smem:[#allocation2 + $0x401]]  ;;  %s1244_s17 = sld [smem:[#allocation22_spill]] }
  0x34   :  { %v250_v36 = vstv %s835_s20  ;;  %v245_v50 = vmul.f32 %v244_v27, %v876_v63  ;;  %v215_v51 = vadd.f32 %v213_v52, %v209_v24  ;;  %v48_v7 = vmul.f32 %v46_v9, %v894_v23  ;;  %s1242_s0 = sld [smem:[#allocation25_spill]]  ;;  %s1056_s19 = sld [smem:[#allocation2 + $0x202]] }
  0x35   :  { %v256_v56 = vstv %s848_s14  ;;  %v917_v59 = vmax.f32 %v191_v40, 0.0  ;;  %v241_v4 = vadd.f32 %v239_v49, %v235_v41  ;;  %v54_v8 = vmul.f32 %v52_v10, %v902_v39  ;;  %s1024_s21 = sld [smem:[#allocation2 + $0x481]]  ;;  %s1058_s18 = sld [smem:[#allocation2 + $0x282]] }
  0x36   :  { %v219_v52 = vmul.f32 %v218_v48, %v215_v51  ;;  %v44_v24 = vadd.f32 %v42_v60, %v716_v18  ;;  %v74_v40 = vmul.f32 %v72_v17, %v889_v20  ;;  %v80_v10 = vmul.f32 %v78_v21, %v894_v23  ;;  %s1037_s1 = sld [smem:[#allocation2 + $0x601]]  ;;  %s1070_s6 = sld [smem:[#allocation2 + $0x302]] }
  0x37   :  { %v262_v19 = vstv %s850_s28  ;;  %v247_v41 = vadd.f32 %v245_v50, %v241_v4  ;;  %v251_v9 = vmul.f32 %v250_v36, %v917_v59  ;;  %v86_v49 = vmul.f32 %v84_v22, %v902_v39  ;;  %s1072_s10 = sld [smem:[#allocation2 + $0x382]]  ;;  %s1105_s14 = sld [smem:[#allocation2 + $0x203]] }
  0x38   :  { %v223_v18 = vadd.f32 %v222_v57, %v219_v52  ;;  %v50_v16 = vadd.f32 %v48_v7, %v44_v24  ;;  %v76_v17 = vadd.f32 %v74_v40, %v70_v5  ;;  %v102_v60 = vmul.f32 %v100_v29, %v685_v6  ;;  %s1083_s13 = sld [smem:[#allocation2 + $0x402]]  ;;  %s1107_s20 = sld [smem:[#allocation2 + $0x283]] }
  0x39   :  { %v253_v50 = vadd.f32 %v251_v9, %v247_v41  ;;  %v106_v51 = vmul.f32 %v104_v30, %v889_v20  ;;  %v112_v21 = vmul.f32 %v110_v34, %v894_v23  ;;  %v118_v22 = vmul.f32 %v116_v37, %v902_v39  ;;  %s1085_s15 = sld [smem:[#allocation2 + $0x482]]  ;;  %s1111_s22 = sld [smem:[#allocation2 + $0x303]] }
  0x3a   :  { %v957_v4 = vmax.f32 %v223_v18, 0.0  ;;  %v56_v7 = vadd.f32 %v54_v8, %v50_v16  ;;  %v82_v52 = vadd.f32 %v80_v10, %v76_v17  ;;  %v134_v29 = vmul.f32 %v132_v44, %v685_v6  ;;  %s1101_s5 = sld [smem:[#allocation2 + $0x602]]  ;;  %s1113_s25 = sld [smem:[#allocation2 + $0x383]] }
  0x3b   :  { %v108_v24 = vadd.f32 %v106_v51, %v102_v60  ;;  %v138_v30 = vmul.f32 %v136_v45, %v889_v20  ;;  %v144_v34 = vmul.f32 %v142_v46, %v894_v23  ;;  %v150_v37 = vmul.f32 %v148_v53, %v902_v39  ;;  %s1121_s26 = sld [smem:[#allocation2 + $0x403]]  ;;  %s611_s30 = smov [#allocation5]  }
  0x3c   :  { %v257_v8 = vmul.f32 %v256_v56, %v957_v4  ;;  %v60_v5 = vmul.f32 %v58_v13, %v56_v7  ;;  %v88_v40 = vadd.f32 %v86_v49, %v82_v52  ;;  %v166_v44 = vmul.f32 %v164_v61, %v685_v6  ;;  %s1126_s28 = sld [smem:[#allocation2 + $0x483]] }
  0x3d   :  { %v114_v45 = vadd.f32 %v112_v21, %v108_v24  ;;  %v140_v41 = vadd.f32 %v138_v30, %v134_v29  ;;  %v170_v46 = vmul.f32 %v168_v62, %v889_v20  ;;  %v176_v53 = vmul.f32 %v174_v12, %v894_v23  ;;  %s1143_s29 = sld [smem:[#allocation2 + $0x603]] }
  0x3e   :  { %v259_v9 = vadd.f32 %v257_v8, %v253_v50  ;;  %v64_v13 = vadd.f32 %v62_v14, %v60_v5  ;;  %v92_v10 = vmul.f32 %v90_v26, %v88_v40  ;;  %v182_v61 = vmul.f32 %v180_v15, %v902_v39 }
  0x3f   :  { %v120_v49 = vadd.f32 %v118_v22, %v114_v45  ;;  %v146_v18 = vadd.f32 %v144_v34, %v140_v41  ;;  %v172_v62 = vadd.f32 %v170_v46, %v166_v44  ;;  %v198_v12 = vmul.f32 %v196_v32, %v685_v6 }
  0x40   :  { %v263_v14 = vadd.f32 %v262_v19, %v259_v9  ;;  %v1003_v26 = vmax.f32 %v64_v13, 0.0  ;;  %v96_v15 = vadd.f32 %v94_v28, %v92_v10  ;;  %v202_v16 = vmul.f32 %v200_v33, %v889_v20 }
  0x41   :  { %v124_v17 = vmul.f32 %v122_v38, %v120_v49  ;;  %v152_v32 = vadd.f32 %v150_v37, %v146_v18  ;;  %v178_v60 = vadd.f32 %v176_v53, %v172_v62  ;;  %v208_v50 = vmul.f32 %v206_v43, %v894_v23 }
  0x42   :  { %v503_v51 = vmul.f32 -1.442695, %v263_v14  ;;  %v1019_v28 = vmax.f32 %v96_v15, 0.0  ;;  %v204_v21 = vadd.f32 %v202_v16, %v198_v12  ;;  %v214_v33 = vmul.f32 %v212_v47, %v902_v39 }
  0x43   :  { %v128_v38 = vadd.f32 %v126_v42, %v124_v17  ;;  %v156_v22 = vmul.f32 %v154_v54, %v152_v32  ;;  %v184_v7 = vadd.f32 %v182_v61, %v178_v60  ;;  %v230_v43 = vmul.f32 %v228_v58, %v1003_v26 }
  0x44   :  { %538 = vpow2.f32 %v503_v51  ;;  %v210_v52 = vadd.f32 %v208_v50, %v204_v21  ;;  %v1245_v29 = vstv %s1242_s0  ;;  %v283_v47 = vstv %s979_s7  ;;  %s449_s7 = sshll.u32 %s611_s30, 4  ;;  %s450_s7 = int_to_ptr.vmem [resolvable:$true] %s449_s7 }
  0x45   :  { %v234_v24 = vmul.f32 %v1245_v29, %v1019_v28  ;;  %v1039_v30 = vmax.f32 %v128_v38, 0.0  ;;  %v1246_v42 = vstv %s1243_s2  ;;  %v1247_v34 = vstv %s1244_s17  ;;  %s582_s8 = scalar_lea.vmem %s450_s7, 128  ;;  %p587_p6 = scmp.lt.s32.totalorder %s450_s7, %s450_s7 }
  0x46   :  { %v160_v54 = vadd.f32 %v1246_v42, %v156_v22  ;;  %v188_v37 = vmul.f32 %v1247_v34, %v184_v7  ;;  %v284_v58 = vmul.f32 %v283_v47, %v802_v55  ;;  %v216_v8 = vadd.f32 %v214_v33, %v210_v52  ;;  %p583_p5 = scmp.ne.s32.totalorder %s450_s7, %s582_s8  ;;  %p588_p7 = scmp.lt.s32.totalorder %s582_s8, %s582_s8 }
  0x47   :  { %v236_v5 = vadd.f32 %v234_v24, %v230_v43  ;;  %v287_v40 = vstv %s994_s16  ;;  %v293_v44 = vstv %s996_s23  ;;  %v240_v46 = vmul.f32 %v238_v25, %v1039_v30 }
  0x48   :  { %v1048_v45 = vmax.f32 %v160_v54, 0.0  ;;  %v192_v41 = vadd.f32 %v190_v31, %v188_v37  ;;  %v288_v53 = vmul.f32 %v287_v40, %v828_v11  ;;  %v220_v9 = vmul.f32 %v218_v48, %v216_v8  ;;  %p589_p8 = por %p588_p7, %p587_p6 }
  0x49   :  { %v294_v13 = vmul.f32 %v293_v44, %v852_v35  ;;  %v299_v10 = vstv %s1010_s4  ;;  %v305_v61 = vstv %s1012_s9  ;;  %v242_v31 = vadd.f32 %v240_v46, %v236_v5 }
  0x4a   :  { %v1065_v49 = vmax.f32 %v192_v41, 0.0  ;;  %v246_v25 = vmul.f32 %v244_v27, %v1048_v45  ;;  %v290_v18 = vadd.f32 %v288_v53, %v284_v58  ;;  %v224_v62 = vadd.f32 %v222_v57, %v220_v9  ;;  %p590_p9 = pnand %p589_p8, %p583_p5 }
  0x4b   :  { %v300_v48 = vmul.f32 %v299_v10, %v876_v63  ;;  %v306_v12 = vmul.f32 %v305_v61, %v917_v59  ;;  %v311_v14 = vstv %s1024_s21  ;;  %v317_v57 = vstv %s1037_s1 }
  0x4c   :  { %v248_v15 = vadd.f32 %v246_v25, %v242_v31  ;;  %v252_v16 = vmul.f32 %v250_v36, %v1065_v49  ;;  %v296_v17 = vadd.f32 %v294_v13, %v290_v18  ;;  %v312_v27 = vmul.f32 %v311_v14, %v957_v4 }
  0x4d   :  { %v1087_v32 = vmax.f32 %v224_v62, 0.0  ;;  %v285_v60 = vmul.f32 %v283_v47, %v1003_v26  ;;  %v289_v50 = vmul.f32 %v287_v40, %v1019_v28  ;;  %v295_v36 = vmul.f32 %v293_v44, %v1039_v30 }
  0x4e   :  { %v254_v51 = vadd.f32 %v252_v16, %v248_v15  ;;  %v302_v21 = vadd.f32 %v300_v48, %v296_v17  ;;  %v301_v33 = vmul.f32 %v299_v10, %v1048_v45  ;;  %v539_v38 = vpop.eup %538  ;;  %v307_v43 = vmul.f32 %v305_v61, %v1065_v49 }
  0x4f   :  { %v258_v22 = vmul.f32 %v256_v56, %v1087_v32  ;;  %v291_v7 = vadd.f32 %v289_v50, %v285_v60  ;;  %v313_v52 = vmul.f32 %v311_v14, %v1087_v32  ;;  %v271_v29 = vadd.f32 1.0, %v539_v38 }
  0x50   :  { %v308_v24 = vadd.f32 %v306_v12, %v302_v21  ;;  %v337_v47 = vstv %s1056_s19  ;;  %v341_v42 = vstv %s1058_s18  ;;  %v347_v8 = vstv %s1070_s6 }
  0x51   :  { %v260_v54 = vadd.f32 %v258_v22, %v254_v51  ;;  %v297_v34 = vadd.f32 %v295_v36, %v291_v7  ;;  %v338_v37 = vmul.f32 %v337_v47, %v802_v55  ;;  %v342_v56 = vmul.f32 %v341_v42, %v828_v11 }
  0x52   :  { %540 = vrcp.f32 %v271_v29  ;;  %v314_v58 = vadd.f32 %v312_v27, %v308_v24  ;;  %v353_v5 = vstv %s1072_s10  ;;  %v348_v46 = vmul.f32 %v347_v8, %v852_v35 }
  0x53   :  { %v264_v40 = vadd.f32 %v262_v19, %v260_v54  ;;  %v303_v44 = vadd.f32 %v301_v33, %v297_v34  ;;  %v344_v41 = vadd.f32 %v342_v56, %v338_v37  ;;  %v354_v9 = vmul.f32 %v353_v5, %v876_v63 }
  0x54   :  { %v318_v53 = vadd.f32 %v317_v57, %v314_v58  ;;  %v359_v13 = vstv %s1083_s13  ;;  %v365_v10 = vstv %s1085_s15  ;;  %v339_v48 = vmul.f32 %v337_v47, %v1003_v26 }
  0x55   :  { %v504_v61 = vmul.f32 -1.442695, %v264_v40  ;;  %v309_v31 = vadd.f32 %v307_v43, %v303_v44  ;;  %v350_v25 = vadd.f32 %v348_v46, %v344_v41  ;;  %v360_v18 = vmul.f32 %v359_v13, %v917_v59 }
  0x56   :  { %v512_v62 = vmul.f32 -1.442695, %v318_v53  ;;  %v366_v19 = vmul.f32 %v365_v10, %v957_v4  ;;  %v343_v15 = vmul.f32 %v341_v42, %v1019_v28  ;;  %v371_v16 = vstv %s1101_s5 }
  0x57   :  { %542 = vpow2.f32 %v504_v61  ;;  %v315_v12 = vadd.f32 %v313_v52, %v309_v31  ;;  %v356_v14 = vadd.f32 %v354_v9, %v350_v25  ;;  %v349_v17 = vmul.f32 %v347_v8, %v1039_v30 }
  0x58   :  { %544 = vpow2.f32 %v512_v62  ;;  %v355_v27 = vmul.f32 %v353_v5, %v1048_v45  ;;  %v345_v51 = vadd.f32 %v343_v15, %v339_v48  ;;  %v361_v21 = vmul.f32 %v359_v13, %v1065_v49 }
  0x59   :  { %v319_v60 = vadd.f32 %v317_v57, %v315_v12  ;;  %v362_v50 = vadd.f32 %v360_v18, %v356_v14  ;;  %v391_v36 = vstv %s1105_s14  ;;  %v395_v33 = vstv %s1107_s20 }
  0x5a   :  { %v401_v38 = vstv %s1111_s22  ;;  %v407_v22 = vstv %s1113_s25  ;;  %v351_v52 = vadd.f32 %v349_v17, %v345_v51  ;;  %v392_v29 = vmul.f32 %v391_v36, %v802_v55 }
  0x5b   :  { %v513_v7 = vmul.f32 -1.442695, %v319_v60  ;;  %v368_v43 = vadd.f32 %v366_v19, %v362_v50  ;;  %v367_v47 = vmul.f32 %v365_v10, %v1087_v32  ;;  %v396_v57 = vmul.f32 %v395_v33, %v828_v11 }
  0x5c   :  { %v541_v24 = vpop.eup %540  ;;  %v402_v42 = vmul.f32 %v401_v38, %v852_v35  ;;  %v413_v54 = vstv %s1121_s26  ;;  %v357_v56 = vadd.f32 %v355_v27, %v351_v52  ;;  %v408_v8 = vmul.f32 %v407_v22, %v876_v63 }
  0x5d   :  { %v277_v34 = vmul.f32 %v541_v24, %v643_v0  ;;  %546 = vpow2.f32 %v513_v7  ;;  %v372_v37 = vadd.f32 %v371_v16, %v368_v43  ;;  %v398_v58 = vadd.f32 %v396_v57, %v392_v29 }
  0x5e   :  { %v419_v5 = vstv %s1126_s28  ;;  %v363_v40 = vadd.f32 %v361_v21, %v357_v56  ;;  %v393_v11 = vmul.f32 %v391_v36, %v1003_v26  ;;  %v414_v35 = vmul.f32 %v413_v54, %v917_v59 }
  0x5f   :  { %280 = vst.msk [vmem:[#allocation5] sm:$0x1] %vm279_vm0, %v277_v34  ;;  %v521_v55 = vmul.f32 -1.442695, %v372_v37  ;;  %v404_v44 = vadd.f32 %v402_v42, %v398_v58  ;;  %v397_v0 = vmul.f32 %v395_v33, %v1019_v28  ;;  %v403_v41 = vmul.f32 %v401_v38, %v1039_v30 }
  0x60   :  { %v369_v53 = vadd.f32 %v367_v47, %v363_v40  ;;  %v420_v63 = vmul.f32 %v419_v5, %v957_v4  ;;  %v409_v31 = vmul.f32 %v407_v22, %v1048_v45  ;;  %v415_v28 = vmul.f32 %v413_v54, %v1065_v49 }
  0x61   :  { %v543_v46 = vpop.eup %542  ;;  %548 = vpow2.f32 %v521_v55  ;;  %v410_v10 = vadd.f32 %v408_v8, %v404_v44  ;;  %v399_v61 = vadd.f32 %v397_v0, %v393_v11  ;;  %v425_v62 = vstv %s1143_s29 }
  0x62   :  { %v545_v9 = vpop.eup %544  ;;  %v272_v13 = vadd.f32 1.0, %v543_v46  ;;  %v373_v25 = vadd.f32 %v371_v16, %v369_v53  ;;  %v421_v4 = vmul.f32 %v419_v5, %v1087_v32 }
  0x63   :  { %v326_v26 = vadd.f32 1.0, %v545_v9  ;;  %v416_v59 = vadd.f32 %v414_v35, %v410_v10  ;;  %v405_v18 = vadd.f32 %v403_v41, %v399_v61 }
  0x64   :  { %550 = vrcp.f32 %v272_v13  ;;  %v522_v30 = vmul.f32 -1.442695, %v373_v25 }
  0x65   :  { %552 = vrcp.f32 %v326_v26  ;;  %v422_v19 = vadd.f32 %v420_v63, %v416_v59  ;;  %v411_v48 = vadd.f32 %v409_v31, %v405_v18 }
  0x66   :  { %554 = vpow2.f32 %v522_v30 }
  0x67   :  { %v547_v12 = vpop.eup %546  ;;  %v426_v15 = vadd.f32 %v425_v62, %v422_v19  ;;  %v417_v17 = vadd.f32 %v415_v28, %v411_v48 }
  0x68   :  { %v327_v14 = vadd.f32 1.0, %v547_v12 }
  0x69   :  { %v530_v45 = vmul.f32 -1.442695, %v426_v15  ;;  %v423_v16 = vadd.f32 %v421_v4, %v417_v17 }
  0x6a   :  { %556 = vrcp.f32 %v327_v14 }
  0x6b   :  { %v549_v27 = vpop.eup %548  ;;  %558 = vpow2.f32 %v530_v45  ;;  %v427_v50 = vadd.f32 %v425_v62, %v423_v16 }
  0x6c   :  { %v380_v60 = vadd.f32 1.0, %v549_v27 }
  0x6d   :  { %v531_v51 = vmul.f32 -1.442695, %v427_v50 }
  0x6e   :  { %v551_v49 = vpop.eup %550  ;;  %560 = vrcp.f32 %v380_v60 }
  0x6f   :  { %v553_v21 = vpop.eup %552  ;;  %v278_v36 = vmul.f32 %v551_v49, %v685_v6  ;;  %562 = vpow2.f32 %v531_v51 }
  0x70   :  { %v332_v32 = vmul.f32 %v553_v21, %v652_v1  ;;  %v555_v33 = vpop.eup %554 }
  0x71   :  { %281 = vst.msk [vmem:[#allocation5 + $0x4] sm:$0x1] %vm279_vm0, %v278_v36  ;;  %v381_v38 = vadd.f32 1.0, %v555_v33 }
  0x72   :  { %334 = vst.msk [vmem:[#allocation5 + $0x1] sm:$0x1] %vm279_vm0, %v332_v32 }
  0x73   :  { %564 = vrcp.f32 %v381_v38 }
  0x74   :  { %v557_v22 = vpop.eup %556 }
  0x75   :  { %v333_v7 = vmul.f32 %v557_v22, %v889_v20  ;;  %v559_v43 = vpop.eup %558 }
  0x76   :  { %v434_v52 = vadd.f32 1.0, %v559_v43 }
  0x77   :  { %335 = vst.msk [vmem:[#allocation5 + $0x5] sm:$0x1] %vm279_vm0, %v333_v7 }
  0x78   :  { %v561_v29 = vpop.eup %560  ;;  %566 = vrcp.f32 %v434_v52 }
  0x79   :  { %v386_v6 = vmul.f32 %v561_v29, %v661_v2  ;;  %v563_v1 = vpop.eup %562 }
  0x7a   :  { %v435_v24 = vadd.f32 1.0, %v563_v1 }
  0x7b   :  { %388 = vst.msk [vmem:[#allocation5 + $0x2] sm:$0x1] %vm279_vm0, %v386_v6 }
  0x7c   :  { %568 = vrcp.f32 %v435_v24 }
  0x7d   :  { %v565_v47 = vpop.eup %564 }
  0x7e   :  { %v387_v57 = vmul.f32 %v565_v47, %v894_v23 }
  0x80   :  { %389 = vst.msk [vmem:[#allocation5 + $0x6] sm:$0x1] %vm279_vm0, %v387_v57 }
  0x82   :  { %v567_v42 = vpop.eup %566 }
  0x83   :  { %v440_v20 = vmul.f32 %v567_v42, %v670_v3 }
  0x85   :  { %442 = vst.msk [vmem:[#allocation5 + $0x3] sm:$0x1] %vm279_vm0, %v440_v20 }
  0x86   :  { %v569_v54 = vpop.eup %568 }
  0x87   :  { %v441_v2 = vmul.f32 %v569_v54, %v902_v39 }
  0x89   :  { %443 = vst.msk [vmem:[#allocation5 + $0x7] sm:$0x1] %vm279_vm0, %v441_v2 }
  0x8a   :  { %593 = shalt.err (!%p590_p9)
}
  0x8b   :  { %s1248_s16 = sld [smem:[#allocation26_spill]] }
  0x91   :  { %s594_s23 = scalar_lea.hbm %s1248_s16, 128 }
  0x92   :  { %p595_p10 = scmp.ne.s32.totalorder %s1248_s16, %s594_s23  ;;  %p598_p11 = scmp.lt.u32.totalorder %s594_s23, %s1248_s16 }
  0x94   :  { %p600_p12 = pnand %p598_p11, %p595_p10 }
  0x96   :  { %603 = shalt.err (!%p600_p12)
}
  0x97   :  { %s612_s9 = smov 64   ;;  %s613_s0 = smov 4  }
  0x98   :  { %455 = dma.vmem_to_hbm [thread:$0]  %s450_s7, 128, %s1248_s16, [#allocation3], %s612_s9, %s612_s9, %s613_s0  }
  0x99   :  { %606 = dma.done.wait [#allocation3], 128  }
  0x9a   :  { %607 = vsyncadd [#allocation3], 4294967168 }
  0x9b   :  { %459 = vsyncpa [#allocation3], 1 }
  0x9c   :  { %460 = vsyncpa [#allocation4], 1 }

</bundles_post_ra>
